<compile_context>
chip_gen: v7x
topology: tpu7x:2x2x1
jax: 0.10.0
libtpu: 0.0.40
codegen_flags: <defaults>
</compile_context>

<pallas_src>
import jax
import jax.numpy as jnp
from jax import lax
from jax.experimental import pallas as pl
from jax.experimental.pallas import tpu as pltpu


# ----------------------------------------------------------------------------
# Pallas kernel: time-chunked LIF recurrence with DCT-domain spectral filter.
# ----------------------------------------------------------------------------
def _freq_lif_kernel(x_ref, g_ref, dct_t_ref, dct_ref, out_ref, mem_scr):
    # Grid: (row_tiles [parallel], time_chunks [arbitrary/sequential]).
    tc = pl.program_id(1)

    # Membrane starts at zero (torch.zeros_like(x[0])) for each row tile.
    @pl.when(tc == 0)
    def _():
        mem_scr[...] = jnp.zeros_like(mem_scr)

    dct_t = dct_t_ref[...]        # [HW, HW] forward 2-D DCT (spatial -> freq)
    dct = dct_ref[...]            # [HW, HW] inverse 2-D DCT (freq -> spatial)
    n_steps = x_ref.shape[0]      # static time-chunk length

    def body(i, mem):
        # Leaky integrate.
        mem = 0.25 * mem + x_ref[i]                                   # [R, HW]
        # Frequency filter surrogate: DCT -> per-step/channel gain -> inverse.
        spec = jnp.dot(mem, dct_t, preferred_element_type=jnp.float32)
        spec = spec * g_ref[i]
        mem = jnp.dot(spec, dct, preferred_element_type=jnp.float32)
        # spike_activation forward value with v_th = 1.0.
        spike = (mem > 0.5).astype(jnp.float32)
        out_ref[i] = spike.astype(out_ref.dtype)
        # Hard reset where spiked.
        return mem * (1.0 - spike)

    mem_scr[...] = lax.fori_loop(0, n_steps, body, mem_scr[...], unroll=True)


# ----------------------------------------------------------------------------
# Wrapper.
# ----------------------------------------------------------------------------
def _pick_time_chunk(t, max_chunk=8):
    for tc in range(min(t, max_chunk), 0, -1):
        if t % tc == 0 and t // tc >= 2:
            return tc
    return t


def _pick_row_tile(rows):
    # Split the collapsed batch*channel axis across TensorCores (v7x) only if
    # each half still forms dense 8-sublane tiles.
    if rows % 16 == 0:
        return rows // 2
    return rows


def freq_lif_pallas(x, params):
    """x: [T, B, C, H, W] f32 -> spikes [T, B, C, H, W] bf16 (exact 0/1)."""
    T, B, C, H, W = x.shape
    HW = H * W
    rows = B * C

    x_f = x.reshape(T, rows, HW).astype(jnp.float32)

    # Per-step, per-channel spectral gains, expanded over batch so the kernel
    # sees one dense [rows, HW] gain tile per time step (rows = b*C + c).
    g = jnp.broadcast_to(params["gain"][:, None, :, :], (T, B, C, HW))
    g = g.reshape(T, rows, HW).astype(jnp.float32)

    dct = params["dct"].astype(jnp.float32)   # [HW, HW], rows = frequency
    dct_t = dct.T                             # forward transform operand

    t_chunk = _pick_time_chunk(T)
    row_tile = _pick_row_tile(rows)
    grid = (rows // row_tile, T // t_chunk)

    kernel = pl.pallas_call(
        _freq_lif_kernel,
        out_shape=jax.ShapeDtypeStruct((T, rows, HW), jnp.bfloat16),
        grid_spec=pltpu.PrefetchScalarGridSpec(
            num_scalar_prefetch=0,
            grid=grid,
            in_specs=[
                pl.BlockSpec((t_chunk, row_tile, HW), lambda r, t: (t, r, 0)),  # x
                pl.BlockSpec((t_chunk, row_tile, HW), lambda r, t: (t, r, 0)),  # gain
                pl.BlockSpec((HW, HW), lambda r, t: (0, 0)),                    # DCT^T
                pl.BlockSpec((HW, HW), lambda r, t: (0, 0)),                    # DCT
            ],
            out_specs=pl.BlockSpec((t_chunk, row_tile, HW),
                                   lambda r, t: (t, r, 0)),
            scratch_shapes=[pltpu.VMEM((row_tile, HW), jnp.float32)],
        ),
        compiler_params=pltpu.CompilerParams(
            dimension_semantics=("parallel", "arbitrary"),
            vmem_limit_bytes=48 * 1024 * 1024),
    )
    out = kernel(x_f, g, dct_t, dct)
    return out.reshape(T, B, C, H, W)


# ----------------------------------------------------------------------------
# Pure-JAX reference (mirrors the kernel math).
# ----------------------------------------------------------------------------
def freq_lif_ref(x, params):
    T, B, C, H, W = x.shape
    HW = H * W
    rows = B * C
    x_f = x.reshape(T, rows, HW).astype(jnp.float32)
    g = jnp.broadcast_to(params["gain"][:, None, :, :], (T, B, C, HW))
    g = g.reshape(T, rows, HW).astype(jnp.float32)
    dct = params["dct"].astype(jnp.float32)
    hi = jax.lax.Precision.HIGHEST

    mem = jnp.zeros((rows, HW), jnp.float32)
    outs = []
    for t in range(T):
        mem = 0.25 * mem + x_f[t]
        spec = jnp.dot(mem, dct.T, precision=hi)
        spec = spec * g[t]
        mem = jnp.dot(spec, dct, precision=hi)
        spike = (mem > 0.5).astype(jnp.float32)
        mem = mem * (1.0 - spike)
        outs.append(spike)
    return jnp.stack(outs).reshape(T, B, C, H, W)


# ----------------------------------------------------------------------------
# Deterministic parameter construction.
# ----------------------------------------------------------------------------
def _dct1d(n):
    k = jnp.arange(n, dtype=jnp.float32)[:, None]   # frequency index
    i = jnp.arange(n, dtype=jnp.float32)[None, :]   # spatial index
    basis = jnp.cos(jnp.pi * (i + 0.5) * k / n)
    scale = jnp.where(k == 0, jnp.sqrt(1.0 / n), jnp.sqrt(2.0 / n))
    return basis * scale                            # orthonormal DCT-II [n, n]


def make_params(step, C, H, W):
    HW = H * W
    dh = _dct1d(H)
    dw = _dct1d(W)
    dct2 = jnp.einsum("ui,vj->uvij", dh, dw).reshape(HW, HW)   # [freq, spatial]
    gain = 1.0 + 0.25 * jax.random.normal(
        jax.random.PRNGKey(42), (step, C, HW), dtype=jnp.float32)
    return {"dct": dct2.astype(jnp.float32), "gain": gain}


if __name__ == "__main__":
    STEP, B, C, H, W = 8, 2, 4, 16, 16
    x = jax.random.normal(jax.random.PRNGKey(0), (STEP, B, C, H, W),
                          dtype=jnp.float32)
    params = make_params(STEP, C, H, W)

    out = freq_lif_pallas(x, params)
    out = jax.block_until_ready(out)

    ref = freq_lif_ref(x, params)
    assert out.shape == (STEP, B, C, H, W)
    # Binary spikes; allow rare flips where the membrane lands exactly at the
    # threshold due to f32 matmul rounding differences (kernel MXU vs XLA).
    match_frac = float(jnp.mean((out.astype(jnp.float32) == ref)
                                .astype(jnp.float32)))
    assert match_frac >= 0.98, f"spike mismatch fraction too high: {1 - match_frac}"

    print("KERNEL_OK")
</pallas_src>

<mosaic_0001>
module attributes {stable_mosaic.version = 11 : i64} {
  func.func @_freq_lif_kernel(%arg0: i32, %arg1: i32, %arg2: memref<4x8x256xf32, #tpu.memory_space<vmem>>, %arg3: memref<4x8x256xf32, #tpu.memory_space<vmem>>, %arg4: memref<256x256xf32, #tpu.memory_space<vmem>>, %arg5: memref<256x256xf32, #tpu.memory_space<vmem>>, %arg6: memref<4x8x256xbf16, #tpu.memory_space<vmem>>, %arg7: memref<8x256xf32, #tpu.memory_space<vmem>>) attributes {dimension_semantics = [#tpu.dimension_semantics<parallel>, #tpu.dimension_semantics<arbitrary>], iteration_bounds = array<i64: 1, 2>, scalar_prefetch = 0 : i64, scratch_operands = 1 : i64, tpu.core_type = #tpu.core_type<tc>, window_params = [{transform_indices = @transform_0, window_bounds = array<i64: 4, 8, 256>}, {transform_indices = @transform_1, window_bounds = array<i64: 4, 8, 256>}, {pipeline_mode = #tpu.pipeline_mode<synchronous>, transform_indices = @transform_2, window_bounds = array<i64: 256, 256>}, {pipeline_mode = #tpu.pipeline_mode<synchronous>, transform_indices = @transform_3, window_bounds = array<i64: 256, 256>}, {transform_indices = @transform_4, window_bounds = array<i64: 4, 8, 256>}]} {
    %c0_i32 = arith.constant 0 : i32
    %0 = arith.cmpi eq, %arg1, %c0_i32 : i32
    %1 = arith.extui %0 : i1 to i32
    %c0_i32_0 = arith.constant 0 : i32
    %2 = arith.cmpi ne, %1, %c0_i32_0 : i32
    scf.if %2 {
      %cst_52 = arith.constant 0.000000e+00 : f32
      %103 = vector.broadcast %cst_52 : f32 to vector<8x256xf32>
      %c0_53 = arith.constant 0 : index
      %c0_54 = arith.constant 0 : index
      %104 = vector.load %arg7[%c0_53, %c0_54] : memref<8x256xf32, #tpu.memory_space<vmem>>, vector<8x256xf32>
      tpu.vector_store %arg7[%c0_53, %c0_54], %103 {strides = array<i32>} : memref<8x256xf32, #tpu.memory_space<vmem>>, vector<8x256xf32>,
    } else {
    }
    %c0 = arith.constant 0 : index
    %c0_1 = arith.constant 0 : index
    %3 = vector.load %arg4[%c0, %c0_1] : memref<256x256xf32, #tpu.memory_space<vmem>>, vector<256x256xf32>
    %c0_2 = arith.constant 0 : index
    %c0_3 = arith.constant 0 : index
    %4 = vector.load %arg5[%c0_2, %c0_3] : memref<256x256xf32, #tpu.memory_space<vmem>>, vector<256x256xf32>
    %c0_4 = arith.constant 0 : index
    %c0_5 = arith.constant 0 : index
    %5 = vector.load %arg7[%c0_4, %c0_5] : memref<8x256xf32, #tpu.memory_space<vmem>>, vector<8x256xf32>
    %c0_i32_6 = arith.constant 0 : i32
    %cst = arith.constant 2.500000e-01 : f32
    %6 = vector.broadcast %cst : f32 to vector<8x256xf32>
    %7 = arith.mulf %6, %5 : vector<8x256xf32>
    %8 = arith.index_cast %c0_i32_6 : i32 to index
    %c0_7 = arith.constant 0 : index
    %c0_8 = arith.constant 0 : index
    %9 = vector.load %arg2[%8, %c0_7, %c0_8] : memref<4x8x256xf32, #tpu.memory_space<vmem>>, vector<1x8x256xf32>
    %10 = vector.shape_cast %9 : vector<1x8x256xf32> to vector<8x256xf32>
    %11 = arith.addf %7, %10 : vector<8x256xf32>
    %cst_9 = arith.constant dense<0.000000e+00> : vector<8x256xf32>
    %12 = tpu.matmul %11, %3, %cst_9 {dimension_numbers = #tpu.dot_dimension_numbers<[1], [0], [0], [1], [0, 0, 1, 1], [], []>} : vector<8x256xf32>, vector<256x256xf32>, vector<8x256xf32> -> vector<8x256xf32>
    %13 = arith.index_cast %c0_i32_6 : i32 to index
    %c0_10 = arith.constant 0 : index
    %c0_11 = arith.constant 0 : index
    %14 = vector.load %arg3[%13, %c0_10, %c0_11] : memref<4x8x256xf32, #tpu.memory_space<vmem>>, vector<1x8x256xf32>
    %15 = vector.shape_cast %14 : vector<1x8x256xf32> to vector<8x256xf32>
    %16 = arith.mulf %12, %15 : vector<8x256xf32>
    %cst_12 = arith.constant dense<0.000000e+00> : vector<8x256xf32>
    %17 = tpu.matmul %16, %4, %cst_12 {dimension_numbers = #tpu.dot_dimension_numbers<[1], [0], [0], [1], [0, 0, 1, 1], [], []>} : vector<8x256xf32>, vector<256x256xf32>, vector<8x256xf32> -> vector<8x256xf32>
    %cst_13 = arith.constant 5.000000e-01 : f32
    %18 = vector.broadcast %cst_13 : f32 to vector<8x256xf32>
    %19 = arith.cmpf ogt, %17, %18 : vector<8x256xf32>
    %20 = arith.extui %19 : vector<8x256xi1> to vector<8x256xi32>
    %21 = arith.sitofp %20 : vector<8x256xi32> to vector<8x256xf32>
    %22 = arith.truncf %21 : vector<8x256xf32> to vector<8x256xbf16>
    %23 = arith.index_cast %c0_i32_6 : i32 to index
    %c0_14 = arith.constant 0 : index
    %c0_15 = arith.constant 0 : index
    %24 = vector.load %arg6[%23, %c0_14, %c0_15] : memref<4x8x256xbf16, #tpu.memory_space<vmem>>, vector<1x8x256xbf16>
    %25 = vector.shape_cast %24 : vector<1x8x256xbf16> to vector<8x256xbf16>
    %26 = vector.shape_cast %22 : vector<8x256xbf16> to vector<1x8x256xbf16>
    tpu.vector_store %arg6[%23, %c0_14, %c0_15], %26 {strides = array<i32>} : memref<4x8x256xbf16, #tpu.memory_space<vmem>>, vector<1x8x256xbf16>,
    %cst_16 = arith.constant 1.000000e+00 : f32
    %27 = vector.broadcast %cst_16 : f32 to vector<8x256xf32>
    %28 = arith.subf %27, %21 : vector<8x256xf32>
    %29 = arith.mulf %17, %28 : vector<8x256xf32>
    %c1_i32 = arith.constant 1 : i32
    %cst_17 = arith.constant 2.500000e-01 : f32
    %30 = vector.broadcast %cst_17 : f32 to vector<8x256xf32>
    %31 = arith.mulf %30, %29 : vector<8x256xf32>
    %32 = arith.index_cast %c1_i32 : i32 to index
    %c0_18 = arith.constant 0 : index
    %c0_19 = arith.constant 0 : index
    %33 = vector.load %arg2[%32, %c0_18, %c0_19] : memref<4x8x256xf32, #tpu.memory_space<vmem>>, vector<1x8x256xf32>
    %34 = vector.shape_cast %33 : vector<1x8x256xf32> to vector<8x256xf32>
    %35 = arith.addf %31, %34 : vector<8x256xf32>
    %cst_20 = arith.constant dense<0.000000e+00> : vector<8x256xf32>
    %36 = tpu.matmul %35, %3, %cst_20 {dimension_numbers = #tpu.dot_dimension_numbers<[1], [0], [0], [1], [0, 0, 1, 1], [], []>} : vector<8x256xf32>, vector<256x256xf32>, vector<8x256xf32> -> vector<8x256xf32>
    %37 = arith.index_cast %c1_i32 : i32 to index
    %c0_21 = arith.constant 0 : index
    %c0_22 = arith.constant 0 : index
    %38 = vector.load %arg3[%37, %c0_21, %c0_22] : memref<4x8x256xf32, #tpu.memory_space<vmem>>, vector<1x8x256xf32>
    %39 = vector.shape_cast %38 : vector<1x8x256xf32> to vector<8x256xf32>
    %40 = arith.mulf %36, %39 : vector<8x256xf32>
    %cst_23 = arith.constant dense<0.000000e+00> : vector<8x256xf32>
    %41 = tpu.matmul %40, %4, %cst_23 {dimension_numbers = #tpu.dot_dimension_numbers<[1], [0], [0], [1], [0, 0, 1, 1], [], []>} : vector<8x256xf32>, vector<256x256xf32>, vector<8x256xf32> -> vector<8x256xf32>
    %cst_24 = arith.constant 5.000000e-01 : f32
    %42 = vector.broadcast %cst_24 : f32 to vector<8x256xf32>
    %43 = arith.cmpf ogt, %41, %42 : vector<8x256xf32>
    %44 = arith.extui %43 : vector<8x256xi1> to vector<8x256xi32>
    %45 = arith.sitofp %44 : vector<8x256xi32> to vector<8x256xf32>
    %46 = arith.truncf %45 : vector<8x256xf32> to vector<8x256xbf16>
    %47 = arith.index_cast %c1_i32 : i32 to index
    %c0_25 = arith.constant 0 : index
    %c0_26 = arith.constant 0 : index
    %48 = vector.load %arg6[%47, %c0_25, %c0_26] : memref<4x8x256xbf16, #tpu.memory_space<vmem>>, vector<1x8x256xbf16>
    %49 = vector.shape_cast %48 : vector<1x8x256xbf16> to vector<8x256xbf16>
    %50 = vector.shape_cast %46 : vector<8x256xbf16> to vector<1x8x256xbf16>
    tpu.vector_store %arg6[%47, %c0_25, %c0_26], %50 {strides = array<i32>} : memref<4x8x256xbf16, #tpu.memory_space<vmem>>, vector<1x8x256xbf16>,
    %cst_27 = arith.constant 1.000000e+00 : f32
    %51 = vector.broadcast %cst_27 : f32 to vector<8x256xf32>
    %52 = arith.subf %51, %45 : vector<8x256xf32>
    %53 = arith.mulf %41, %52 : vector<8x256xf32>
    %c2_i32 = arith.constant 2 : i32
    %cst_28 = arith.constant 2.500000e-01 : f32
    %54 = vector.broadcast %cst_28 : f32 to vector<8x256xf32>
    %55 = arith.mulf %54, %53 : vector<8x256xf32>
    %56 = arith.index_cast %c2_i32 : i32 to index
    %c0_29 = arith.constant 0 : index
    %c0_30 = arith.constant 0 : index
    %57 = vector.load %arg2[%56, %c0_29, %c0_30] : memref<4x8x256xf32, #tpu.memory_space<vmem>>, vector<1x8x256xf32>
    %58 = vector.shape_cast %57 : vector<1x8x256xf32> to vector<8x256xf32>
    %59 = arith.addf %55, %58 : vector<8x256xf32>
    %cst_31 = arith.constant dense<0.000000e+00> : vector<8x256xf32>
    %60 = tpu.matmul %59, %3, %cst_31 {dimension_numbers = #tpu.dot_dimension_numbers<[1], [0], [0], [1], [0, 0, 1, 1], [], []>} : vector<8x256xf32>, vector<256x256xf32>, vector<8x256xf32> -> vector<8x256xf32>
    %61 = arith.index_cast %c2_i32 : i32 to index
    %c0_32 = arith.constant 0 : index
    %c0_33 = arith.constant 0 : index
    %62 = vector.load %arg3[%61, %c0_32, %c0_33] : memref<4x8x256xf32, #tpu.memory_space<vmem>>, vector<1x8x256xf32>
    %63 = vector.shape_cast %62 : vector<1x8x256xf32> to vector<8x256xf32>
    %64 = arith.mulf %60, %63 : vector<8x256xf32>
    %cst_34 = arith.constant dense<0.000000e+00> : vector<8x256xf32>
    %65 = tpu.matmul %64, %4, %cst_34 {dimension_numbers = #tpu.dot_dimension_numbers<[1], [0], [0], [1], [0, 0, 1, 1], [], []>} : vector<8x256xf32>, vector<256x256xf32>, vector<8x256xf32> -> vector<8x256xf32>
    %cst_35 = arith.constant 5.000000e-01 : f32
    %66 = vector.broadcast %cst_35 : f32 to vector<8x256xf32>
    %67 = arith.cmpf ogt, %65, %66 : vector<8x256xf32>
    %68 = arith.extui %67 : vector<8x256xi1> to vector<8x256xi32>
    %69 = arith.sitofp %68 : vector<8x256xi32> to vector<8x256xf32>
    %70 = arith.truncf %69 : vector<8x256xf32> to vector<8x256xbf16>
    %71 = arith.index_cast %c2_i32 : i32 to index
    %c0_36 = arith.constant 0 : index
    %c0_37 = arith.constant 0 : index
    %72 = vector.load %arg6[%71, %c0_36, %c0_37] : memref<4x8x256xbf16, #tpu.memory_space<vmem>>, vector<1x8x256xbf16>
    %73 = vector.shape_cast %72 : vector<1x8x256xbf16> to vector<8x256xbf16>
    %74 = vector.shape_cast %70 : vector<8x256xbf16> to vector<1x8x256xbf16>
    tpu.vector_store %arg6[%71, %c0_36, %c0_37], %74 {strides = array<i32>} : memref<4x8x256xbf16, #tpu.memory_space<vmem>>, vector<1x8x256xbf16>,
    %cst_38 = arith.constant 1.000000e+00 : f32
    %75 = vector.broadcast %cst_38 : f32 to vector<8x256xf32>
    %76 = arith.subf %75, %69 : vector<8x256xf32>
    %77 = arith.mulf %65, %76 : vector<8x256xf32>
    %c3_i32 = arith.constant 3 : i32
    %cst_39 = arith.constant 2.500000e-01 : f32
    %78 = vector.broadcast %cst_39 : f32 to vector<8x256xf32>
    %79 = arith.mulf %78, %77 : vector<8x256xf32>
    %80 = arith.index_cast %c3_i32 : i32 to index
    %c0_40 = arith.constant 0 : index
    %c0_41 = arith.constant 0 : index
    %81 = vector.load %arg2[%80, %c0_40, %c0_41] : memref<4x8x256xf32, #tpu.memory_space<vmem>>, vector<1x8x256xf32>
    %82 = vector.shape_cast %81 : vector<1x8x256xf32> to vector<8x256xf32>
    %83 = arith.addf %79, %82 : vector<8x256xf32>
    %cst_42 = arith.constant dense<0.000000e+00> : vector<8x256xf32>
    %84 = tpu.matmul %83, %3, %cst_42 {dimension_numbers = #tpu.dot_dimension_numbers<[1], [0], [0], [1], [0, 0, 1, 1], [], []>} : vector<8x256xf32>, vector<256x256xf32>, vector<8x256xf32> -> vector<8x256xf32>
    %85 = arith.index_cast %c3_i32 : i32 to index
    %c0_43 = arith.constant 0 : index
    %c0_44 = arith.constant 0 : index
    %86 = vector.load %arg3[%85, %c0_43, %c0_44] : memref<4x8x256xf32, #tpu.memory_space<vmem>>, vector<1x8x256xf32>
    %87 = vector.shape_cast %86 : vector<1x8x256xf32> to vector<8x256xf32>
    %88 = arith.mulf %84, %87 : vector<8x256xf32>
    %cst_45 = arith.constant dense<0.000000e+00> : vector<8x256xf32>
    %89 = tpu.matmul %88, %4, %cst_45 {dimension_numbers = #tpu.dot_dimension_numbers<[1], [0], [0], [1], [0, 0, 1, 1], [], []>} : vector<8x256xf32>, vector<256x256xf32>, vector<8x256xf32> -> vector<8x256xf32>
    %cst_46 = arith.constant 5.000000e-01 : f32
    %90 = vector.broadcast %cst_46 : f32 to vector<8x256xf32>
    %91 = arith.cmpf ogt, %89, %90 : vector<8x256xf32>
    %92 = arith.extui %91 : vector<8x256xi1> to vector<8x256xi32>
    %93 = arith.sitofp %92 : vector<8x256xi32> to vector<8x256xf32>
    %94 = arith.truncf %93 : vector<8x256xf32> to vector<8x256xbf16>
    %95 = arith.index_cast %c3_i32 : i32 to index
    %c0_47 = arith.constant 0 : index
    %c0_48 = arith.constant 0 : index
    %96 = vector.load %arg6[%95, %c0_47, %c0_48] : memref<4x8x256xbf16, #tpu.memory_space<vmem>>, vector<1x8x256xbf16>
    %97 = vector.shape_cast %96 : vector<1x8x256xbf16> to vector<8x256xbf16>
    %98 = vector.shape_cast %94 : vector<8x256xbf16> to vector<1x8x256xbf16>
    tpu.vector_store %arg6[%95, %c0_47, %c0_48], %98 {strides = array<i32>} : memref<4x8x256xbf16, #tpu.memory_space<vmem>>, vector<1x8x256xbf16>,
    %cst_49 = arith.constant 1.000000e+00 : f32
    %99 = vector.broadcast %cst_49 : f32 to vector<8x256xf32>
    %100 = arith.subf %99, %93 : vector<8x256xf32>
    %101 = arith.mulf %89, %100 : vector<8x256xf32>
    %c4_i32 = arith.constant 4 : i32
    %c0_50 = arith.constant 0 : index
    %c0_51 = arith.constant 0 : index
    %102 = vector.load %arg7[%c0_50, %c0_51] : memref<8x256xf32, #tpu.memory_space<vmem>>, vector<8x256xf32>
    tpu.vector_store %arg7[%c0_50, %c0_51], %101 {strides = array<i32>} : memref<8x256xf32, #tpu.memory_space<vmem>>, vector<8x256xf32>,
    return
  }
  func.func @transform_0(%arg0: i32, %arg1: i32) -> (i32, i32, i32) {
    %c0_i32 = arith.constant 0 : i32
    %c0_i32_0 = arith.constant 0 : i32
    return %arg1, %arg0, %c0_i32 : i32, i32, i32
  }
  func.func @transform_1(%arg0: i32, %arg1: i32) -> (i32, i32, i32) {
    %c0_i32 = arith.constant 0 : i32
    %c0_i32_0 = arith.constant 0 : i32
    return %arg1, %arg0, %c0_i32 : i32, i32, i32
  }
  func.func @transform_2(%arg0: i32, %arg1: i32) -> (i32, i32) {
    %c0_i32 = arith.constant 0 : i32
    %c0_i32_0 = arith.constant 0 : i32
    %c0_i32_1 = arith.constant 0 : i32
    return %c0_i32, %c0_i32_0 : i32, i32
  }
  func.func @transform_3(%arg0: i32, %arg1: i32) -> (i32, i32) {
    %c0_i32 = arith.constant 0 : i32
    %c0_i32_0 = arith.constant 0 : i32
    %c0_i32_1 = arith.constant 0 : i32
    return %c0_i32, %c0_i32_0 : i32, i32
  }
  func.func @transform_4(%arg0: i32, %arg1: i32) -> (i32, i32, i32) {
    %c0_i32 = arith.constant 0 : i32
    %c0_i32_0 = arith.constant 0 : i32
    return %arg1, %arg0, %c0_i32 : i32, i32, i32
  }
}

</mosaic_0001>

<bundles_post_ra>
// kernel: tpu_custom_call.1
= control target key start
LH: loop header
LB: loop body
LE: loop exit
PB: predicated region body
PF: predicated region fallthrough
CT: control target
= control target key end

     0   :  { %s2941_s0 = inlined_call_operand.hbm [shape: f32[8,8,256], index: 0, kind: input, shape index: {}]   ;;  %s2942_s1 = inlined_call_operand.hbm [shape: f32[8,8,256], index: 1, kind: input, shape index: {}]   ;;  %s2943_s2 = inlined_call_operand.hbm [shape: f32[256,256], index: 2, kind: input, shape index: {}]   ;;  %s2944_s3 = inlined_call_operand.hbm [shape: f32[256,256], index: 3, kind: input, shape index: {}]   ;;  %s2945_s4 = inlined_call_operand.hbm [shape: bf16[8,8,256], index: 4, kind: output, shape index: {}]  }
   0x1   :  { %3001 = sst [smem:[#allocation43_spill]] %s2941_s0 }
   0x2   :  { %3002 = sst [smem:[#allocation44_spill]] %s2943_s2 }
   0x3   :  { %3003 = sst [smem:[#allocation45_spill]] %s2944_s3 }
   0x4   :  { %9 = vsyncpa [#allocation4], 0 }
   0x5   :  { %11 = vsyncpa [#allocation4 + $0x1], 0 }
   0x6   :  { %12 = vsyncpa [#allocation7], 0 }
   0x7   :  { %14 = vsyncpa [#allocation7 + $0x1], 0 }
   0x8   :  { %15 = vsyncpa [#allocation10], 0 }
   0x9   :  { %16 = vsyncpa [#allocation5], 0 }
   0xa   :  { %18 = vsyncpa [#allocation5 + $0x1], 0  ;;  %s2210_s15 = smov 0   ;;  %s2212_s16 = smov 0  }
   0xb   :  { %s2214_s17 = smov 0   ;;  %s2216_s18 = smov 0  }
   0xc   :  { %s2218_s19 = smov 0   ;;  %s2220_s20 = smov 0  }
   0xd LB: > { %3004 = sst [smem:[#allocation17_spill]] %s2168_s19  ;;  %s2241_s21 = sadd.s32 4294967295, %s2172_s20   ;;  %s2172_s20 = sphi %s2220_s20, %s24_s20   ;;  %s2168_s19 = sphi %s2218_s19, %s3087_s19   ;;  %s2164_s18 = sphi %s2216_s18, %s3086_s18   ;;  %s2160_s17 = sphi %s2214_s17, %s3090_s17   ;;  %s2156_s16 = sphi %s2212_s16, %s3089_s16   ;;  %s2152_s15 = sphi %s2210_s15, %s3088_s15  }
   0xe   : > { %s1293_s22 = sadd.s32 4294967294, %s2172_s20   ;;  %p58_p0 = scmp.ne.s32.totalorder %s2156_s16, %s2152_s15 }
   0xf   : > { %p2946_p1 = scmp.eq.s32.totalorder %s2241_s21, 0  ;;  %p160_p3 = scmp.eq.s32.totalorder %s1293_s22, 1 }
  0x10   : > { %p1294_p5 = scmp.ge.s32.totalorder %s2172_s20, 1  ;;  %p167_p7 = scmp.lt.s32.totalorder %s2172_s20, 3 }
  0x11   : > { %p2250_p4 = por %p2946_p1, %p58_p0  ;;  %p2255_p6 = por %p160_p3, %p58_p0 }
  0x12   : > { %p2260_p8 = pnand %p1294_p5, %p167_p7  ;;  %s2174_s26 = smov [#allocation8]  }
  0x13   : > { %s3005_s23 = scalar_select %p2250_p4, 1, 0 }
  0x14   : > { %s3006_s24 = scalar_select %p2255_p6, 1, 0 }
  0x15   : > { %s179_s27 = sshll.u32 %s2174_s26, 4  ;;  %p1882_p9 = pneg %p2260_p8  ;;  %s2264_s27 = int_to_ptr.vmem [resolvable:$true] %s179_s27 }
  0x16   : > { %s2175_s29 = smov [#allocation9]   ;;  %s3009_s2 = sld [smem:[#allocation44_spill]] }
  0x17   : > { %p2271_p11 = pnand %p1882_p9, %p2946_p1  ;;  %s192_s30 = sshll.u32 %s2175_s29, 4  ;;  %s2275_s30 = int_to_ptr.vmem [resolvable:$true] %s192_s30 }
  0x19   : > { %p1964_p13 = pneg %p2271_p11 }
  0x1c   : > { %s1962_s7 = scalar_lea.hbm %s3009_s2, 8192 }
  0x1d   : > { %p1963_p12 = scmp.ne.s32.totalorder %s3009_s2, %s1962_s7  ;;  %p1969_p5 = scmp.lt.u32.totalorder %s1962_s7, %s3009_s2 }
  0x1f   : > { %p1965_p0 = pnand %p1964_p13, %p1963_p12 }
  0x21   : > { %p1966_p3 = pneg %p1965_p0 }
  0x23   : > { %p1971_p7 = pnand %p1969_p5, %p1966_p3 }
  0x25   : > { %1974 = shalt.err (!%p1971_p7)
}
  0x26   : > { %s1975_s12 = scalar_lea.vmem %s2264_s27, 8192  ;;  %p1983_p2 = scmp.lt.s32.totalorder %s2264_s27, %s2264_s27 }
  0x27   : > { %p1976_p9 = scmp.ne.s32.totalorder %s2264_s27, %s1975_s12  ;;  %p1984_p12 = scmp.lt.s32.totalorder %s1975_s12, %s1975_s12 }
  0x29   : > { %p1978_p10 = pnand %p1976_p9, %p1964_p13  ;;  %p1985_p0 = por %p1984_p12, %p1983_p2 }
  0x2b   : > { %p1979_p1 = pneg %p1978_p10 }
  0x2d   : > { %p1986_p6 = pnand %p1985_p0, %p1979_p1 }
  0x2f   : > { %1989 = shalt.err (!%p1986_p6)
}
  0x30   : > { %s2947_s13 = smov 256   ;;  %s2949_s14 = smov 16  }
  0x31   : > { %1885 = dma.hbm_to_vmem [thread:$0]  (!%p2271_p11), %s3009_s2, 8192, %s2264_s27, [#allocation7], %s2947_s13, %s2947_s13, %s2949_s14  }
  0x32   : > { %s3010_s3 = sld [smem:[#allocation45_spill]] }
  0x38   : > { %s1990_s6 = scalar_lea.hbm %s3010_s3, 8192 }
  0x39   : > { %p1991_p1 = scmp.ne.s32.totalorder %s3010_s3, %s1990_s6  ;;  %p1997_p10 = scmp.lt.u32.totalorder %s1990_s6, %s3010_s3 }
  0x3b   : > { %p1993_p2 = pnand %p1991_p1, %p1964_p13 }
  0x3d   : > { %p1994_p6 = pneg %p1993_p2 }
  0x3f   : > { %p1999_p3 = pnand %p1997_p10, %p1994_p6 }
  0x41   : > { %2002 = shalt.err (!%p1999_p3)
}
  0x42   : > { %s2003_s27 = scalar_lea.vmem %s2275_s30, 8192  ;;  %p2011_p12 = scmp.lt.s32.totalorder %s2275_s30, %s2275_s30 }
  0x43   : > { %p2004_p5 = scmp.ne.s32.totalorder %s2275_s30, %s2003_s27  ;;  %p2012_p0 = scmp.lt.s32.totalorder %s2003_s27, %s2003_s27 }
  0x45   : > { %p2006_p7 = pnand %p2004_p5, %p1964_p13  ;;  %p2013_p1 = por %p2012_p0, %p2011_p12 }
  0x47   : > { %p2007_p9 = pneg %p2006_p7 }
  0x49   : > { %p2014_p2 = pnand %p2013_p1, %p2007_p9 }
  0x4b   : > { %2017 = shalt.err (!%p2014_p2)
}
  0x4c   : > { %1888 = dma.hbm_to_vmem [thread:$0]  (!%p2271_p11), %s3010_s3, 8192, %s2275_s30, [#allocation10], %s2947_s13, %s2947_s13, %s2949_s14  }
  0x4d   : > { %s33_s28 = sadd.s32 1, %s2168_s19  ;;  %s45_s22 = sadd.s32 1, %s2160_s17 }
  0x4e   : > { %p34_p13 = scmp.ge.s32.totalorder %s33_s28, 2  ;;  %p52_p6 = scmp.ne.s32.totalorder %s2160_s17, %s2156_s16 }
  0x4f   : > { %p53_p10 = scmp.eq.s32.totalorder %s2172_s20, 0  ;;  %p1902_p3 = scmp.lt.s32.totalorder %s2172_s20, 2 }
  0x50   : > { %s3092_s28 = smov (%p34_p13, %s33_s28), 0  ;;  %p3012_p7 = scmp.eq.s32.totalorder %s2241_s21, 1 }
  0x51   : > { %3011 = sst [smem:[#allocation18_spill]] %s3092_s28  ;;  %p54_p5 = por %p53_p10, %p52_p6 }
  0x52   : > { %p2345_p9 = por %p3012_p7, %p52_p6  ;;  %s40_s29 = ssub.s32 %s2168_s19, %s3092_s28 }
  0x53   : > { %s206_s5 = sand.u32 1, %s2160_s17   ;;  %p43_p12 = scmp.eq.s32.totalorder %s40_s29, 0 }
  0x54   : > { %s3013_s26 = scalar_select %p2345_p9, 1, 0 }
  0x55   : > { %s2352_s30 = sshll.u32 %s206_s5, 6  ;;  %s1347_s6 = sshll.u32 %s2168_s19, 10 }
  0x56   : > { %s2356_s7 = scalar_select %p43_p12, %s2160_s17, %s45_s22  }
  0x57   : > { %s3014_s0 = sld [smem:[#allocation43_spill]]  ;;  %s210_s27 = scalar_lea.vmem [#allocation3], %s2352_s30 }
  0x58   : > { %s220_s11 = sshll.u32 %s210_s27, 4  ;;  %p2366_p11 = pnand %p1902_p3, %p54_p5  ;;  %s2370_s11 = int_to_ptr.vmem [resolvable:$true] %s220_s11 }
  0x59   : > { %s2375_s8 = scalar_lea.hbm %s2942_s1, %s1347_s6  ;;  %s2377_s9 = scalar_lea.sflag [#allocation4], %s206_s5 }
  0x5a   : > { %p2020_p1 = pneg %p2366_p11 }
  0x5d   : > { %s2361_s10 = scalar_lea.hbm %s3014_s0, %s1347_s6  ;;  %s2023_s2 = scalar_lea.hbm %s3014_s0, 2048 }
  0x5e   : > { %s2018_s13 = scalar_lea.hbm %s2361_s10, 1024  ;;  %p2024_p6 = scmp.lt.u32.totalorder %s2361_s10, %s3014_s0 }
  0x5f   : > { %p2019_p0 = scmp.ne.s32.totalorder %s2361_s10, %s2018_s13  ;;  %p2025_p10 = scmp.lt.u32.totalorder %s2023_s2, %s2018_s13 }
  0x60   : > { %p2027_p5 = scmp.lt.u32.totalorder %s2018_s13, %s2361_s10 }
  0x61   : > { %p2021_p2 = pnand %p2020_p1, %p2019_p0  ;;  %p2026_p3 = por %p2025_p10, %p2024_p6 }
  0x63   : > { %p2022_p13 = pneg %p2021_p2  ;;  %p2028_p7 = por %p2027_p5, %p2026_p3 }
  0x65   : > { %p2029_p12 = pnand %p2028_p7, %p2022_p13 }
  0x67   : > { %2032 = shalt.err (!%p2029_p12)
}
  0x68   : > { %s2033_s5 = scalar_lea.vmem %s2370_s11, 1024  ;;  %s2178_s14 = smov [#allocation3]  }
  0x69   : > { %p2034_p0 = scmp.ne.s32.totalorder %s2370_s11, %s2033_s5  ;;  %s2038_s6 = sshll.u32 %s2178_s14, 4  ;;  %s2039_s6 = int_to_ptr.vmem [resolvable:$false] %s2038_s6 }
  0x6a   : > { %s2040_s3 = scalar_lea.vmem %s2039_s6, 2048  ;;  %p2041_p4 = scmp.lt.s32.totalorder %s2370_s11, %s2039_s6 }
  0x6b   : > { %p2036_p2 = pnand %p2034_p0, %p2020_p1  ;;  %p2042_p6 = scmp.lt.s32.totalorder %s2040_s3, %s2033_s5 }
  0x6d   : > { %p2037_p9 = pneg %p2036_p2  ;;  %p2043_p10 = por %p2042_p6, %p2041_p4 }
  0x6f   : > { %p2044_p3 = pnand %p2043_p10, %p2037_p9 }
  0x71   : > { %2047 = shalt.err (!%p2044_p3)
}
  0x72   : > { %s3016_s2 = smov 16   ;;  %s3017_s13 = smov 256  }
  0x73   : > { %1892 = dma.hbm_to_vmem [thread:$0]  (!%p2366_p11), %s2361_s10, 1024, %s2370_s11, %s2377_s9, %s3017_s13, %s3017_s13, %s3016_s2  }
  0x74   : > { %s234_s28 = scalar_lea.vmem [#allocation6], %s2352_s30  ;;  %s230_s29 = sand.u32 1, %s2172_s20  }
  0x75   : > { %s244_s22 = sshll.u32 %s234_s28, 4  ;;  %s2412_s27 = scalar_lea.sflag [#allocation7], %s230_s29  ;;  %s2410_s22 = int_to_ptr.vmem [resolvable:$true] %s244_s22 }
  0x76   : > { %s2048_s5 = scalar_lea.hbm %s2375_s8, 1024  ;;  %s2053_s3 = scalar_lea.hbm %s2942_s1, 2048 }
  0x77   : > { %p2049_p4 = scmp.ne.s32.totalorder %s2375_s8, %s2048_s5  ;;  %p2054_p5 = scmp.lt.u32.totalorder %s2375_s8, %s2942_s1 }
  0x78   : > { %p2055_p7 = scmp.lt.u32.totalorder %s2053_s3, %s2048_s5  ;;  %p2057_p0 = scmp.lt.u32.totalorder %s2048_s5, %s2375_s8 }
  0x79   : > { %p2051_p9 = pnand %p2049_p4, %p2020_p1 }
  0x7a   : > { %p2056_p12 = por %p2055_p7, %p2054_p5 }
  0x7b   : > { %p2052_p13 = pneg %p2051_p9 }
  0x7c   : > { %p2058_p2 = por %p2057_p0, %p2056_p12 }
  0x7e   : > { %p2059_p6 = pnand %p2058_p2, %p2052_p13 }
  0x80   : > { %2062 = shalt.err (!%p2059_p6)
}
  0x81   : > { %s2063_s30 = scalar_lea.vmem %s2410_s22, 1024  ;;  %s2179_s10 = smov [#allocation6]  }
  0x82   : > { %p2064_p10 = scmp.ne.s32.totalorder %s2410_s22, %s2063_s30  ;;  %s2068_s11 = sshll.u32 %s2179_s10, 4  ;;  %s2069_s11 = int_to_ptr.vmem [resolvable:$false] %s2068_s11 }
  0x83   : > { %s2070_s0 = scalar_lea.vmem %s2069_s11, 2048  ;;  %p2071_p9 = scmp.lt.s32.totalorder %s2410_s22, %s2069_s11 }
  0x84   : > { %p2066_p3 = pnand %p2064_p10, %p2020_p1  ;;  %p2072_p5 = scmp.lt.s32.totalorder %s2070_s0, %s2063_s30 }
  0x86   : > { %p2067_p4 = pneg %p2066_p3  ;;  %p2073_p7 = por %p2072_p5, %p2071_p9 }
  0x88   : > { %p2074_p12 = pnand %p2073_p7, %p2067_p4 }
  0x8a   : > { %2077 = shalt.err (!%p2074_p12)
}
  0x8b   : > { %1895 = dma.hbm_to_vmem [thread:$0]  (!%p2366_p11), %s2375_s8, 1024, %s2410_s22, %s2412_s27, %s3017_s13, %s3017_s13, %s3016_s2  }
  0x8c   : > { %256 = sbr.rel (%p2260_p8) target bundleno = 2005 (0x7d5), region = 36 }
  0x93   : > { %s2444_s19 = sand.u32 1, %s2156_s16   ;;  %p3018_p1 = scmp.ne.s32.totalorder %s3005_s23, 0 }
  0x94   : > { %s1307_s9 = sshll.u32 %s2444_s19, 6  ;;  %s259_s28 = scalar_lea.sflag [#allocation4], %s2444_s19 }
  0x95   : > { %s2448_s29 = scalar_lea.vmem [#allocation3], %s1307_s9 }
  0x96   : > { %2131 = dma.done.wait (%p3018_p1), %s259_s28, 1024  }
  0x97   : > { %2133 = vsyncadd (%p3018_p1), %s259_s28, 4294966272  ;;  %s267_s12 = sand.u32 1, %s2241_s21   ;;  %s2455_s8 = scalar_lea.vmem [#allocation6], %s1307_s9 }
  0x98   : > { %s268_s25 = scalar_lea.sflag [#allocation7], %s267_s12 }
  0x99   : > { %2135 = dma.done.wait (%p3018_p1), %s268_s25, 1024  }
  0x9a   : > { %2137 = vsyncadd (%p3018_p1), %s268_s25, 4294966272  ;;  %p3019_p8 = scmp.eq.s32.totalorder %s2241_s21, 0 }
  0x9c   : > { %2139 = dma.done.wait (%p3019_p8), [#allocation7], 8192   ;;  %p3020_p11 = pmov %p3019_p8 }
  0x9d   : > { %p3021_p13 = pmov %p3019_p8 }
  0x9e   : > { %2141 = vsyncadd (%p3020_p11), [#allocation7], 4294959104 }
  0x9f   : > { %2143 = dma.done.wait (%p3021_p13), [#allocation10], 8192   ;;  %p3022_p0 = pmov %p3019_p8 }
  0xa0   : > { %s1311_s2 = sshll.u32 %s2444_s19, 5  ;;  %p1312_p2 = scmp.ne.s32.totalorder %s2164_s18, 0 }
  0xa1   : > { %2145 = vsyncadd (%p3022_p0), [#allocation10], 4294959104  ;;  %s2470_s13 = scalar_lea.vmem [#allocation11], %s1311_s2  ;;  %v2180_v0 = vmov (!%p1312_p2), 0.0  }
  0xa2   : > { %315 = sbr.rel (%p1312_p2) target bundleno = 169 (0xa9), region = 56  ;;  %316 = vst [vmem:[#allocation2] sm:$0xff] (!%p1312_p2), %v2180_v0  ;;  %317 = vst [vmem:[#allocation2 + $0x8] sm:$0xff] (!%p1312_p2), %v2180_v0 }
  0xa9 PF: > { %v319_v1 = vld [vmem:[#allocation8 + $0x8] sm:$0xff]  ;;  %v321_v2 = vld [vmem:[#allocation8 + $0x18] sm:$0xff]  ;;  %v318_v3 = vld [vmem:[#allocation8] sm:$0xff]  ;;  %s1355_s21 = sshll.u32 %s2164_s18, 9  ;;  %s1160_s23 = sshll.u32 %s2470_s13, 4  ;;  %s2891_s23 = int_to_ptr.vmem [resolvable:$true] %s1160_s23 }
  0xaa   : > { %v2473_v4 = vpack.c.bf16 %v321_v2, %v319_v1  ;;  %v320_v5 = vld [vmem:[#allocation8 + $0x10] sm:$0xff]  ;;  %v323_v6 = vld [vmem:[#allocation8 + $0x28] sm:$0xff]  ;;  %v325_v7 = vld [vmem:[#allocation8 + $0x38] sm:$0xff]  ;;  %s2889_s5 = scalar_lea.hbm %s2945_s4, %s1355_s21  ;;  %s1144_s18 = scalar_lea.sflag [#allocation5], %s2444_s19 }
  0xab   : > { %v2475_v8 = vpack.c.bf16 %v320_v5, %v318_v3  ;;  %v2477_v9 = vpack.c.bf16 %v325_v7, %v323_v6  ;;  %v322_v10 = vld [vmem:[#allocation8 + $0x20] sm:$0xff]  ;;  %v324_v11 = vld [vmem:[#allocation8 + $0x30] sm:$0xff]  ;;  %v327_v12 = vld [vmem:[#allocation8 + $0x48] sm:$0xff]  ;;  %s2078_s14 = scalar_lea.vmem %s2891_s23, 512  ;;  %p3083_p10 = scmp.ne.s32.totalorder %s3013_s26, 0 }
  0xac   : > { %3023 = vst [vmem:[#allocation19_spill] sm:$0xff] %v2473_v4  ;;  %1357 = vmatprep.subr.bf16.mxu0 %v2473_v4  ;;  %v329_v13 = vld [vmem:[#allocation8 + $0x58] sm:$0xff]  ;;  %v2481_v14 = vpack.c.bf16 %v324_v11, %v322_v10  ;;  %v326_v16 = vld [vmem:[#allocation8 + $0x40] sm:$0xff]  ;;  %v328_v17 = vld [vmem:[#allocation8 + $0x50] sm:$0xff]  ;;  %p2079_p6 = scmp.ne.s32.totalorder %s2891_s23, %s2078_s14  ;;  %s2182_s6 = smov [#allocation11]  }
  0xad   : > { %3024 = vst [vmem:[#allocation20_spill] sm:$0xff] %v2475_v8  ;;  %3025 = vst [vmem:[#allocation21_spill] sm:$0xff] %v2477_v9  ;;  %1359 = vmatpush1.bf16.msra.mxu0 %v2475_v8  ;;  %v2484_v15 = vpack.c.bf16 %v329_v13, %v327_v12  ;;  %v331_v18 = vld [vmem:[#allocation8 + $0x68] sm:$0xff]  ;;  %v333_v19 = vld [vmem:[#allocation8 + $0x78] sm:$0xff]  ;;  %v2487_v20 = vpack.c.bf16 %v328_v17, %v326_v16  ;;  %s2082_s3 = sshll.u32 %s2182_s6, 4  ;;  %s2083_s3 = int_to_ptr.vmem [resolvable:$false] %s2082_s3 }
  0xae   : > { %1361 = vmatprep.subr.bf16.mxu0 %v2477_v9  ;;  %v2490_v21 = vpack.c.bf16 %v333_v19, %v331_v18  ;;  %v330_v22 = vld [vmem:[#allocation8 + $0x60] sm:$0xff]  ;;  %v332_v23 = vld [vmem:[#allocation8 + $0x70] sm:$0xff]  ;;  %v335_v24 = vld [vmem:[#allocation8 + $0x88] sm:$0xff]  ;;  %p2080_p3 = pnand %p2079_p6, %p3083_p10  ;;  %s2084_s30 = scalar_lea.vmem %s2083_s3, 1024 }
  0xaf   : > { %v337_v25 = vld [vmem:[#allocation8 + $0x98] sm:$0xff]  ;;  %v2493_v26 = vpack.c.bf16 %v332_v23, %v330_v22  ;;  %v334_v28 = vld [vmem:[#allocation8 + $0x80] sm:$0xff]  ;;  %v336_v29 = vld [vmem:[#allocation8 + $0x90] sm:$0xff]  ;;  %p2085_p9 = scmp.lt.s32.totalorder %s2891_s23, %s2083_s3  ;;  %p2086_p5 = scmp.lt.s32.totalorder %s2084_s30, %s2078_s14 }
  0xb0   : > { %v2496_v27 = vpack.c.bf16 %v337_v25, %v335_v24  ;;  %v339_v30 = vld [vmem:[#allocation8 + $0xa8] sm:$0xff]  ;;  %v341_v31 = vld [vmem:[#allocation8 + $0xb8] sm:$0xff]  ;;  %v2499_v32 = vpack.c.bf16 %v336_v29, %v334_v28  ;;  %v338_v34 = vld [vmem:[#allocation8 + $0xa0] sm:$0xff]  ;;  %p2081_p4 = pneg %p2080_p3 }
  0xb1   : > { %1363 = vmatpush1.bf16.msra.mxu0 %v2481_v14  ;;  %v2502_v33 = vpack.c.bf16 %v341_v31, %v339_v30  ;;  %v340_v35 = vld [vmem:[#allocation8 + $0xb0] sm:$0xff]  ;;  %v343_v36 = vld [vmem:[#allocation8 + $0xc8] sm:$0xff]  ;;  %v345_v37 = vld [vmem:[#allocation8 + $0xd8] sm:$0xff]  ;;  %p2087_p7 = por %p2086_p5, %p2085_p9 }
  0xb2   : > { %1365 = vmatprep.subr.bf16.mxu0 %v2484_v15  ;;  %v2505_v38 = vpack.c.bf16 %v340_v35, %v338_v34  ;;  %v342_v39 = vld [vmem:[#allocation8 + $0xc0] sm:$0xff]  ;;  %v2508_v40 = vpack.c.bf16 %v345_v37, %v343_v36  ;;  %v344_v41 = vld [vmem:[#allocation8 + $0xd0] sm:$0xff]  ;;  %v447_v42 = vld [vmem:[#allocation2 + $0x8] sm:$0xff] }
  0xb3   : > { %v451_v43 = vld [vmem:[%s2448_s29 + $0x8] sm:$0xff]  ;;  %v349_v45 = vld [vmem:[#allocation8 + $0xf8] sm:$0xff]  ;;  %v449_v46 = vmul.f32 0.25, %v447_v42  ;;  %v346_v48 = vld [vmem:[#allocation8 + $0xe0] sm:$0xff]  ;;  %v2512_v53 = vpack.c.bf16 %v344_v41, %v342_v39  ;;  %p2088_p12 = pnand %p2087_p7, %p2081_p4 }
  0xb4   : > { %v347_v44 = vld [vmem:[#allocation8 + $0xe8] sm:$0xff]  ;;  %v348_v49 = vld [vmem:[#allocation8 + $0xf0] sm:$0xff]  ;;  %v385_v50 = vld [vmem:[#allocation9 + $0x18] sm:$0xff] }
  0xb5   : > { %1367 = vmatpush1.bf16.msra.mxu0 %v2487_v20  ;;  %v383_v47 = vld [vmem:[#allocation9 + $0x8] sm:$0xff]  ;;  %v382_v51 = vld [vmem:[#allocation9] sm:$0xff]  ;;  %v384_v52 = vld [vmem:[#allocation9 + $0x10] sm:$0xff]  ;;  %v453_v54 = vadd.f32 %v451_v43, %v449_v46  ;;  %v2519_v60 = vpack.c.bf16 %v349_v45, %v347_v44  ;;  %v2528_v5 = vpack.c.bf16 %v348_v49, %v346_v48 }
  0xb6   : > { %1369 = vmatprep.subr.bf16.mxu0 %v2490_v21  ;;  %v2514_v55 = vpack.c.bf16 %v385_v50, %v383_v47  ;;  %v2516_v56 = vpack.c.bf16 %v384_v52, %v382_v51  ;;  %v387_v57 = vld [vmem:[#allocation9 + $0x28] sm:$0xff]  ;;  %v389_v58 = vld [vmem:[#allocation9 + $0x38] sm:$0xff]  ;;  %v386_v59 = vld [vmem:[#allocation9 + $0x20] sm:$0xff] }
  0xb7   : > { %v2521_v61 = vpack.c.bf16 %v389_v58, %v387_v57  ;;  %v388_v62 = vld [vmem:[#allocation9 + $0x30] sm:$0xff]  ;;  %v391_v63 = vld [vmem:[#allocation9 + $0x48] sm:$0xff]  ;;  %v393_v0 = vld [vmem:[#allocation9 + $0x58] sm:$0xff]  ;;  %518 = vmatprep.mubr.f32.mxu0 %v453_v54 }
  0xb8   : > { %3026 = vst [vmem:[#allocation22_spill] sm:$0xff] %v2514_v55  ;;  %v351_v1 = vld [vmem:[#allocation8 + $0x108] sm:$0xff]  ;;  %v353_v2 = vld [vmem:[#allocation8 + $0x118] sm:$0xff]  ;;  %1421 = vmatprep.subr.bf16.mxu1 %v2514_v55  ;;  %v2525_v3 = vpack.c.bf16 %v388_v62, %v386_v59  ;;  %v350_v6 = vld [vmem:[#allocation8 + $0x100] sm:$0xff]  ;;  %v2531_v7 = vpack.c.bf16 %v393_v0, %v391_v63 }
  0xb9   : > { %1371 = vmatpush1.bf16.msra.mxu0 %v2493_v26  ;;  %1423 = vmatpush1.bf16.msra.mxu1 %v2516_v56  ;;  %v390_v10 = vld [vmem:[#allocation9 + $0x40] sm:$0xff]  ;;  %v392_v11 = vld [vmem:[#allocation9 + $0x50] sm:$0xff]  ;;  %v2534_v12 = vpack.c.bf16 %v353_v2, %v351_v1  ;;  %v395_v16 = vld [vmem:[#allocation9 + $0x68] sm:$0xff] }
  0xba   : > { %1373 = vmatprep.subr.bf16.mxu0 %v2496_v27  ;;  %1425 = vmatprep.subr.bf16.mxu1 %v2521_v61  ;;  %v352_v13 = vld [vmem:[#allocation8 + $0x110] sm:$0xff]  ;;  %v397_v17 = vld [vmem:[#allocation9 + $0x78] sm:$0xff]  ;;  %v355_v18 = vld [vmem:[#allocation8 + $0x128] sm:$0xff]  ;;  %v2537_v22 = vpack.c.bf16 %v392_v11, %v390_v10 }
  0xbb   : > { %v357_v19 = vld [vmem:[#allocation8 + $0x138] sm:$0xff]  ;;  %v2540_v23 = vpack.c.bf16 %v352_v13, %v350_v6  ;;  %v354_v24 = vld [vmem:[#allocation8 + $0x120] sm:$0xff]  ;;  %v2543_v25 = vpack.c.bf16 %v397_v17, %v395_v16  ;;  %v396_v29 = vld [vmem:[#allocation9 + $0x70] sm:$0xff] }
  0xbc   : > { %v394_v28 = vld [vmem:[#allocation9 + $0x60] sm:$0xff]  ;;  %v2546_v30 = vpack.c.bf16 %v357_v19, %v355_v18  ;;  %v356_v31 = vld [vmem:[#allocation8 + $0x130] sm:$0xff]  ;;  %v399_v34 = vld [vmem:[#allocation9 + $0x88] sm:$0xff] }
  0xbd   : > { %1375 = vmatpush1.bf16.msra.mxu0 %v2499_v32  ;;  %1427 = vmatpush1.bf16.msra.mxu1 %v2525_v3  ;;  %v401_v35 = vld [vmem:[#allocation9 + $0x98] sm:$0xff]  ;;  %v359_v36 = vld [vmem:[#allocation8 + $0x148] sm:$0xff]  ;;  %v2549_v39 = vpack.c.bf16 %v396_v29, %v394_v28  ;;  %v2552_v41 = vpack.c.bf16 %v356_v31, %v354_v24  ;;  %v358_v42 = vld [vmem:[#allocation8 + $0x140] sm:$0xff] }
  0xbe   : > { %1377 = vmatprep.subr.bf16.mxu0 %v2502_v33  ;;  %1429 = vmatprep.subr.bf16.mxu1 %v2531_v7  ;;  %v361_v37 = vld [vmem:[#allocation8 + $0x158] sm:$0xff]  ;;  %v2555_v43 = vpack.c.bf16 %v401_v35, %v399_v34  ;;  %v398_v44 = vld [vmem:[#allocation9 + $0x80] sm:$0xff]  ;;  %v400_v45 = vld [vmem:[#allocation9 + $0x90] sm:$0xff] }
  0xbf   : > { %v2558_v46 = vpack.c.bf16 %v361_v37, %v359_v36  ;;  %v360_v47 = vld [vmem:[#allocation8 + $0x150] sm:$0xff]  ;;  %v403_v48 = vld [vmem:[#allocation9 + $0xa8] sm:$0xff]  ;;  %v405_v49 = vld [vmem:[#allocation9 + $0xb8] sm:$0xff]  ;;  %v2561_v52 = vpack.c.bf16 %v400_v45, %v398_v44 }
  0xc0   : > { %v363_v50 = vld [vmem:[#allocation8 + $0x168] sm:$0xff]  ;;  %v365_v51 = vld [vmem:[#allocation8 + $0x178] sm:$0xff]  ;;  %v2564_v54 = vpack.c.bf16 %v360_v47, %v358_v42  ;;  %v362_v57 = vld [vmem:[#allocation8 + $0x160] sm:$0xff]  ;;  %v2567_v58 = vpack.c.bf16 %v405_v49, %v403_v48 }
  0xc1   : > { %1379 = vmatpush1.bf16.msra.mxu0 %v2505_v38  ;;  %1431 = vmatpush1.bf16.msra.mxu1 %v2537_v22  ;;  %v402_v59 = vld [vmem:[#allocation9 + $0xa0] sm:$0xff]  ;;  %v404_v62 = vld [vmem:[#allocation9 + $0xb0] sm:$0xff]  ;;  %v2570_v63 = vpack.c.bf16 %v365_v51, %v363_v50  ;;  %v407_v1 = vld [vmem:[#allocation9 + $0xc8] sm:$0xff] }
  0xc2   : > { %1381 = vmatprep.subr.bf16.mxu0 %v2508_v40  ;;  %1433 = vmatprep.subr.bf16.mxu1 %v2543_v25  ;;  %v364_v0 = vld [vmem:[#allocation8 + $0x170] sm:$0xff]  ;;  %v409_v2 = vld [vmem:[#allocation9 + $0xd8] sm:$0xff]  ;;  %v367_v6 = vld [vmem:[#allocation8 + $0x188] sm:$0xff]  ;;  %v2573_v11 = vpack.c.bf16 %v404_v62, %v402_v59 }
  0xc3   : > { %v369_v10 = vld [vmem:[#allocation8 + $0x198] sm:$0xff]  ;;  %v2576_v13 = vpack.c.bf16 %v364_v0, %v362_v57  ;;  %v366_v16 = vld [vmem:[#allocation8 + $0x180] sm:$0xff]  ;;  %v2579_v17 = vpack.c.bf16 %v409_v2, %v407_v1  ;;  %v408_v19 = vld [vmem:[#allocation9 + $0xd0] sm:$0xff] }
  0xc4   : > { %v406_v18 = vld [vmem:[#allocation9 + $0xc0] sm:$0xff]  ;;  %v2582_v24 = vpack.c.bf16 %v369_v10, %v367_v6  ;;  %v368_v28 = vld [vmem:[#allocation8 + $0x190] sm:$0xff]  ;;  %v411_v29 = vld [vmem:[#allocation9 + $0xe8] sm:$0xff] }
  0xc5   : > { %1383 = vmatpush1.bf16.msra.mxu0 %v2512_v53  ;;  %1435 = vmatpush1.bf16.msra.mxu1 %v2549_v39  ;;  %v413_v31 = vld [vmem:[#allocation9 + $0xf8] sm:$0xff]  ;;  %v371_v34 = vld [vmem:[#allocation8 + $0x1a8] sm:$0xff]  ;;  %v2585_v36 = vpack.c.bf16 %v408_v19, %v406_v18  ;;  %v2588_v37 = vpack.c.bf16 %v368_v28, %v366_v16  ;;  %v370_v42 = vld [vmem:[#allocation8 + $0x1a0] sm:$0xff] }
  0xc6   : > { %1385 = vmatprep.subr.bf16.mxu0 %v2519_v60  ;;  %1437 = vmatprep.subr.bf16.mxu1 %v2555_v43  ;;  %v373_v35 = vld [vmem:[#allocation8 + $0x1b8] sm:$0xff]  ;;  %v2591_v44 = vpack.c.bf16 %v413_v31, %v411_v29  ;;  %v410_v45 = vld [vmem:[#allocation9 + $0xe0] sm:$0xff]  ;;  %v412_v47 = vld [vmem:[#allocation9 + $0xf0] sm:$0xff] }
  0xc7   : > { %v2594_v48 = vpack.c.bf16 %v373_v35, %v371_v34  ;;  %v372_v49 = vld [vmem:[#allocation8 + $0x1b0] sm:$0xff]  ;;  %v415_v50 = vld [vmem:[#allocation9 + $0x108] sm:$0xff]  ;;  %v417_v51 = vld [vmem:[#allocation9 + $0x118] sm:$0xff]  ;;  %v2597_v62 = vpack.c.bf16 %v412_v47, %v410_v45 }
  0xc8   : > { %v375_v57 = vld [vmem:[#allocation8 + $0x1c8] sm:$0xff]  ;;  %v377_v59 = vld [vmem:[#allocation8 + $0x1d8] sm:$0xff]  ;;  %v2600_v0 = vpack.c.bf16 %v372_v49, %v370_v42  ;;  %v374_v1 = vld [vmem:[#allocation8 + $0x1c0] sm:$0xff]  ;;  %v2603_v2 = vpack.c.bf16 %v417_v51, %v415_v50 }
  0xc9   : > { %1387 = vmatpush1.bf16.msra.mxu0 %v2528_v5  ;;  %1439 = vmatpush1.bf16.msra.mxu1 %v2561_v52  ;;  %3027 = vst [vmem:[#allocation23_spill] sm:$0xff] %v2597_v62  ;;  %v414_v6 = vld [vmem:[#allocation9 + $0x100] sm:$0xff]  ;;  %v416_v10 = vld [vmem:[#allocation9 + $0x110] sm:$0xff]  ;;  %v2606_v16 = vpack.c.bf16 %v377_v59, %v375_v57  ;;  %v419_v19 = vld [vmem:[#allocation9 + $0x128] sm:$0xff] }
  0xca   : > { %1389 = vmatprep.subr.bf16.mxu0 %v2534_v12  ;;  %1441 = vmatprep.subr.bf16.mxu1 %v2567_v58  ;;  %3028 = vst [vmem:[#allocation24_spill] sm:$0xff] %v2603_v2  ;;  %v376_v18 = vld [vmem:[#allocation8 + $0x1d0] sm:$0xff]  ;;  %v421_v28 = vld [vmem:[#allocation9 + $0x138] sm:$0xff]  ;;  %v379_v29 = vld [vmem:[#allocation8 + $0x1e8] sm:$0xff]  ;;  %v2609_v35 = vpack.c.bf16 %v416_v10, %v414_v6 }
  0xcb   : > { %3029 = vst [vmem:[#allocation25_spill] sm:$0xff] %v2606_v16  ;;  %v381_v31 = vld [vmem:[#allocation8 + $0x1f8] sm:$0xff]  ;;  %v378_v34 = vld [vmem:[#allocation8 + $0x1e0] sm:$0xff]  ;;  %v2612_v42 = vpack.c.bf16 %v376_v18, %v374_v1  ;;  %v446_v45 = vld [vmem:[#allocation2] sm:$0xff]  ;;  %v2615_v47 = vpack.c.bf16 %v421_v28, %v419_v19 }
  0xcc   : > { %v418_v49 = vld [vmem:[#allocation9 + $0x120] sm:$0xff]  ;;  %v420_v50 = vld [vmem:[#allocation9 + $0x130] sm:$0xff]  ;;  %v2618_v51 = vpack.c.bf16 %v381_v31, %v379_v29  ;;  %v423_v59 = vld [vmem:[#allocation9 + $0x148] sm:$0xff]  ;;  %v448_v10 = vmul.f32 0.25, %v446_v45 }
  0xcd   : > { %1391 = vmatpush1.bf16.msra.mxu0 %v2540_v23  ;;  %1443 = vmatpush1.bf16.msra.mxu1 %v2573_v11  ;;  %3030 = vst [vmem:[#allocation26_spill] sm:$0xff] %v2612_v42  ;;  %3031 = vst [vmem:[#allocation27_spill] sm:$0xff] %v2615_v47  ;;  %v380_v57 = vld [vmem:[#allocation8 + $0x1f0] sm:$0xff]  ;;  %v425_v6 = vld [vmem:[#allocation9 + $0x158] sm:$0xff]  ;;  %v2621_v1 = vpack.c.bf16 %v420_v50, %v418_v49 }
  0xce   : > { %1393 = vmatprep.subr.bf16.mxu0 %v2546_v30  ;;  %1445 = vmatprep.subr.bf16.mxu1 %v2579_v17  ;;  %3032 = vst [vmem:[#allocation28_spill] sm:$0xff] %v2618_v51  ;;  %v2624_v18 = vpack.c.bf16 %v380_v57, %v378_v34  ;;  %v450_v19 = vld [vmem:[%s2448_s29] sm:$0xff]  ;;  %v2628_v28 = vpack.c.bf16 %v425_v6, %v423_v59  ;;  %v424_v29 = vld [vmem:[#allocation9 + $0x150] sm:$0xff]  ;;  %v427_v31 = vld [vmem:[#allocation9 + $0x168] sm:$0xff] }
  0xcf   : > { %3033 = vst [vmem:[#allocation29_spill] sm:$0xff] %v2621_v1  ;;  %v452_v45 = vadd.f32 %v450_v19, %v448_v10  ;;  %v426_v50 = vld [vmem:[#allocation9 + $0x160] sm:$0xff]  ;;  %v428_v57 = vld [vmem:[#allocation9 + $0x170] sm:$0xff]  ;;  %v431_v59 = vld [vmem:[#allocation9 + $0x188] sm:$0xff] }
  0xd0   : > { %3034 = vst [vmem:[#allocation30_spill] sm:$0xff] %v2624_v18  ;;  %3035 = vst [vmem:[#allocation31_spill] sm:$0xff] %v2628_v28  ;;  %v433_v6 = vld [vmem:[#allocation9 + $0x198] sm:$0xff]  ;;  %v2640_v10 = vpack.c.bf16 %v428_v57, %v426_v50  ;;  %v430_v19 = vld [vmem:[#allocation9 + $0x180] sm:$0xff] }
  0xd1   : > { %1395 = vmatpush1.bf16.msra.mxu0 %v2552_v41  ;;  %1447 = vmatpush1.bf16.msra.mxu1 %v2585_v36  ;;  %v434_v50 = vld [vmem:[#allocation9 + $0x1a0] sm:$0xff]  ;;  %v436_v57 = vld [vmem:[#allocation9 + $0x1b0] sm:$0xff] }
  0xd2   : > { %1397 = vmatprep.subr.bf16.mxu0 %v2558_v46  ;;  %1449 = vmatprep.subr.bf16.mxu1 %v2591_v44  ;;  %3038 = vst [vmem:[#allocation34_spill] sm:$0xff] %v2640_v10 }
  0xd5   : > { %1399 = vmatpush1.bf16.msra.mxu0 %v2564_v54  ;;  %1451 = vmatpush1.bf16.msra.mxu1 %v2597_v62  ;;  %v429_v62 = vld [vmem:[#allocation9 + $0x178] sm:$0xff] }
  0xd6   : > { %1401 = vmatprep.subr.bf16.mxu0 %v2570_v63  ;;  %1453 = vmatprep.subr.bf16.mxu1 %v2603_v2  ;;  %v422_v2 = vld [vmem:[#allocation9 + $0x140] sm:$0xff]  ;;  %v2636_v34 = vpack.c.bf16 %v429_v62, %v427_v31  ;;  %v435_v62 = vld [vmem:[#allocation9 + $0x1a8] sm:$0xff]  ;;  %v437_v31 = vld [vmem:[#allocation9 + $0x1b8] sm:$0xff] }
  0xd7   : > { %v2632_v49 = vpack.c.bf16 %v424_v29, %v422_v2  ;;  %v2643_v2 = vpack.c.bf16 %v433_v6, %v431_v59  ;;  %v432_v29 = vld [vmem:[#allocation9 + $0x190] sm:$0xff]  ;;  %v439_v59 = vld [vmem:[#allocation9 + $0x1c8] sm:$0xff]  ;;  %v441_v6 = vld [vmem:[#allocation9 + $0x1d8] sm:$0xff] }
  0xd8   : > { %3037 = vst [vmem:[#allocation33_spill] sm:$0xff] %v2636_v34 }
  0xd9   : > { %1403 = vmatpush1.bf16.msra.mxu0 %v2576_v13  ;;  %1455 = vmatpush1.bf16.msra.mxu1 %v2609_v35  ;;  %3036 = vst [vmem:[#allocation32_spill] sm:$0xff] %v2632_v49  ;;  %3039 = vst [vmem:[#allocation35_spill] sm:$0xff] %v2643_v2 }
  0xda   : > { %1405 = vmatprep.subr.bf16.mxu0 %v2582_v24  ;;  %1457 = vmatprep.subr.bf16.mxu1 %v2615_v47 }
  0xdd   : > { %1407 = vmatpush1.bf16.msra.mxu0 %v2588_v37  ;;  %1459 = vmatpush1.bf16.msra.mxu1 %v2621_v1 }
  0xde   : > { %1409 = vmatprep.subr.bf16.mxu0 %v2594_v48  ;;  %1461 = vmatprep.subr.bf16.mxu1 %v2628_v28  ;;  %v2648_v28 = vpack.c.bf16 %v432_v29, %v430_v19  ;;  %v2659_v19 = vpack.c.bf16 %v441_v6, %v439_v59  ;;  %v438_v29 = vld [vmem:[#allocation9 + $0x1c0] sm:$0xff]  ;;  %v444_v59 = vld [vmem:[#allocation9 + $0x1f0] sm:$0xff] }
  0xe0   : > { %3040 = vst [vmem:[#allocation36_spill] sm:$0xff] %v2648_v28  ;;  %3043 = vst [vmem:[#allocation39_spill] sm:$0xff] %v2659_v19 }
  0xe1   : > { %1411 = vmatpush1.bf16.msra.mxu0 %v2600_v0  ;;  %1463 = vmatpush1.bf16.msra.mxu1 %v2632_v49 }
  0xe2   : > { %1413 = vmatprep.subr.bf16.mxu0 %v2606_v16  ;;  %1465 = vmatprep.subr.bf16.mxu1 %v2636_v34 }
  0xe5   : > { %1415 = vmatpush1.bf16.msra.mxu0 %v2612_v42  ;;  %1467 = vmatpush1.bf16.msra.mxu1 %v2640_v10 }
  0xe6   : > { %1417 = vmatprep.subr.bf16.mxu0 %v2618_v51  ;;  %1469 = vmatprep.subr.bf16.mxu1 %v2643_v2 }
  0xe9   : > { %1419 = vmatpush1.bf16.msra.mxu0 %v2624_v18  ;;  %1471 = vmatpush1.bf16.msra.mxu1 %v2648_v28 }
  0xea   : > { %1485 = vmatprep.subr.bf16.mxu0 %v2473_v4 }
  0xec   : > { %519 = vmatmul.mubr.f32.vlgmr.msra.gmra.mrb[0].mxu0 %v452_v45  ;;  %v2651_v45 = vpack.c.bf16 %v437_v31, %v435_v62  ;;  %v445_v31 = vld [vmem:[#allocation9 + $0x1f8] sm:$0xff] }
  0xed   : > { %1487 = vmatpush1.bf16.msra.mxu0 %v2475_v8  ;;  %v2656_v8 = vpack.c.bf16 %v436_v57, %v434_v50  ;;  %v442_v57 = vld [vmem:[#allocation9 + $0x1e0] sm:$0xff] }
  0xee   : > { %1489 = vmatprep.subr.bf16.mxu0 %v2477_v9  ;;  %3041 = vst [vmem:[#allocation37_spill] sm:$0xff] %v2651_v45  ;;  %1473 = vmatprep.subr.bf16.mxu1 %v2651_v45  ;;  %v440_v9 = vld [vmem:[#allocation9 + $0x1d0] sm:$0xff]  ;;  %v2696_v6 = vpack.c.bf16 %v444_v59, %v442_v57 }
  0xef   : > { %3042 = vst [vmem:[#allocation38_spill] sm:$0xff] %v2656_v8  ;;  %1475 = vmatpush1.bf16.msra.mxu1 %v2656_v8  ;;  %v2664_v62 = vpack.c.bf16 %v440_v9, %v438_v29  ;;  %v443_v9 = vld [vmem:[#allocation9 + $0x1e8] sm:$0xff] }
  0xf0   : > { %1477 = vmatprep.subr.bf16.mxu1 %v2659_v19  ;;  %v2694_v50 = vpack.c.bf16 %v445_v31, %v443_v9  ;;  %3046 = vst [vmem:[#allocation42_spill] sm:$0xff] %v2696_v6  ;;  %v526_v29 = vld [vmem:[%s2455_s8 + $0x8] sm:$0xff]  ;;  %v2995_v9 = vmov 0.0  }
  0xf1   : > { %1491 = vmatpush1.bf16.msra.mxu0 %v2481_v14  ;;  %3044 = vst [vmem:[#allocation40_spill] sm:$0xff] %v2664_v62 }
  0xf2   : > { %1493 = vmatprep.subr.bf16.mxu0 %v2484_v15  ;;  %3045 = vst [vmem:[#allocation41_spill] sm:$0xff] %v2694_v50 }
  0xf3   : > { %1479 = vmatpush1.bf16.msra.mxu1 %v2664_v62 }
  0xf4   : > { %1481 = vmatprep.subr.bf16.mxu1 %v2694_v50 }
  0xf5   : > { %1495 = vmatpush1.bf16.msra.mxu0 %v2487_v20 }
  0xf6   : > { %1497 = vmatprep.subr.bf16.mxu0 %v2490_v21 }
  0xf7   : > { %1483 = vmatpush1.bf16.msra.mxu1 %v2696_v6 }
  0xf8   : > { %1549 = vmatprep.subr.bf16.mxu1 %v2514_v55 }
  0xf9   : > { %1499 = vmatpush1.bf16.msra.mxu0 %v2493_v26 }
  0xfa   : > { %1501 = vmatprep.subr.bf16.mxu0 %v2496_v27 }
  0xfd   : > { %1503 = vmatpush1.bf16.msra.mxu0 %v2499_v32 }
  0xfe   : > { %1505 = vmatprep.subr.bf16.mxu0 %v2502_v33 }
 0x101   : > { %1507 = vmatpush1.bf16.msra.mxu0 %v2505_v38 }
 0x102   : > { %1509 = vmatprep.subr.bf16.mxu0 %v2508_v40 }
 0x105   : > { %1511 = vmatpush1.bf16.msra.mxu0 %v2512_v53 }
 0x106   : > { %1513 = vmatprep.subr.bf16.mxu0 %v2519_v60 }
 0x109   : > { %1515 = vmatpush1.bf16.msra.mxu0 %v2528_v5 }
 0x10a   : > { %1517 = vmatprep.subr.bf16.mxu0 %v2534_v12 }
 0x10d   : > { %1519 = vmatpush1.bf16.msra.mxu0 %v2540_v23 }
 0x10e   : > { %1521 = vmatprep.subr.bf16.mxu0 %v2546_v30 }
 0x111   : > { %1523 = vmatpush1.bf16.msra.mxu0 %v2552_v41 }
 0x112   : > { %1525 = vmatprep.subr.bf16.mxu0 %v2558_v46 }
 0x115   : > { %1527 = vmatpush1.bf16.msra.mxu0 %v2564_v54 }
 0x116   : > { %1529 = vmatprep.subr.bf16.mxu0 %v2570_v63 }
 0x119   : > { %1531 = vmatpush1.bf16.msra.mxu0 %v2576_v13 }
 0x11a   : > { %1533 = vmatprep.subr.bf16.mxu0 %v2582_v24 }
 0x11d   : > { %1535 = vmatpush1.bf16.msra.mxu0 %v2588_v37 }
 0x11e   : > { %1537 = vmatprep.subr.bf16.mxu0 %v2594_v48 }
 0x121   : > { %1539 = vmatpush1.bf16.msra.mxu0 %v2600_v0 }
 0x122   : > { %1541 = vmatprep.subr.bf16.mxu0 %v2606_v16 }
 0x125   : > { %1543 = vmatpush1.bf16.msra.mxu0 %v2612_v42  ;;  %v525_v42 = vld [vmem:[%s2455_s8] sm:$0xff] }
 0x126   : > { %1545 = vmatprep.subr.bf16.mxu0 %v2618_v51 }
 0x129   : > { %1547 = vmatpush1.bf16.msra.mxu0 %v2624_v18 }
 0x12a   : > { %1613 = vmatprep.subr.bf16.mxu0 %v2473_v4 }
 0x1bf   : > { %v520_v51 = vpop.f32.mrb[0].mxu0 }
 0x1c0   : > { %v522_v18 = vpop.f32.mrb[1].mxu0  ;;  %v527_v4 = vmul.f32 %v525_v42, %v520_v51  ;;  %v3049_v42 = vld [vmem:[#allocation31_spill] sm:$0xff] }
 0x1c1   : > { %v528_v16 = vmul.f32 %v526_v29, %v522_v18 }
 0x1c3   : > { %593 = vmatprep.mubr.f32.mxu1 %v528_v16  ;;  %v3048_v16 = vld [vmem:[#allocation24_spill] sm:$0xff] }
 0x1c4   : > { %594 = vmatmul.mubr.f32.vlgmr.msra.gmra.mrb[0].mxu1 %v527_v4  ;;  %v3047_v4 = vld [vmem:[#allocation23_spill] sm:$0xff] }
 0x1c5   : > { %1551 = vmatpush1.bf16.msra.mxu1 %v2516_v56 }
 0x1c6   : > { %1553 = vmatprep.subr.bf16.mxu1 %v2521_v61 }
 0x1c9   : > { %1555 = vmatpush1.bf16.msra.mxu1 %v2525_v3 }
 0x1ca   : > { %1557 = vmatprep.subr.bf16.mxu1 %v2531_v7 }
 0x1cd   : > { %1559 = vmatpush1.bf16.msra.mxu1 %v2537_v22 }
 0x1ce   : > { %1561 = vmatprep.subr.bf16.mxu1 %v2543_v25 }
 0x1d1   : > { %1563 = vmatpush1.bf16.msra.mxu1 %v2549_v39 }
 0x1d2   : > { %1565 = vmatprep.subr.bf16.mxu1 %v2555_v43 }
 0x1d5   : > { %1567 = vmatpush1.bf16.msra.mxu1 %v2561_v52 }
 0x1d6   : > { %1569 = vmatprep.subr.bf16.mxu1 %v2567_v58 }
 0x1d9   : > { %1571 = vmatpush1.bf16.msra.mxu1 %v2573_v11 }
 0x1da   : > { %1573 = vmatprep.subr.bf16.mxu1 %v2579_v17 }
 0x1dd   : > { %1575 = vmatpush1.bf16.msra.mxu1 %v2585_v36 }
 0x1de   : > { %1577 = vmatprep.subr.bf16.mxu1 %v2591_v44 }
 0x1e1   : > { %1579 = vmatpush1.bf16.msra.mxu1 %v3047_v4 }
 0x1e2   : > { %1581 = vmatprep.subr.bf16.mxu1 %v3048_v16 }
 0x1e5   : > { %1583 = vmatpush1.bf16.msra.mxu1 %v2609_v35 }
 0x1e6   : > { %1585 = vmatprep.subr.bf16.mxu1 %v2615_v47 }
 0x1e9   : > { %1587 = vmatpush1.bf16.msra.mxu1 %v2621_v1 }
 0x1ea   : > { %1589 = vmatprep.subr.bf16.mxu1 %v3049_v42 }
 0x1ed   : > { %1591 = vmatpush1.bf16.msra.mxu1 %v2632_v49 }
 0x1ee   : > { %1593 = vmatprep.subr.bf16.mxu1 %v2636_v34  ;;  %v3051_v34 = vld [vmem:[#allocation21_spill] sm:$0xff] }
 0x1f1   : > { %1595 = vmatpush1.bf16.msra.mxu1 %v2640_v10  ;;  %v3050_v10 = vld [vmem:[#allocation20_spill] sm:$0xff] }
 0x1f2   : > { %1597 = vmatprep.subr.bf16.mxu1 %v2643_v2 }
 0x1f5   : > { %1599 = vmatpush1.bf16.msra.mxu1 %v2648_v28 }
 0x1f6   : > { %1601 = vmatprep.subr.bf16.mxu1 %v2651_v45  ;;  %v1316_v45 = vld [vmem:[%s2448_s29 + $0x10] sm:$0xff] }
 0x1f9   : > { %1603 = vmatpush1.bf16.msra.mxu1 %v2656_v8  ;;  %v1317_v8 = vld [vmem:[%s2448_s29 + $0x18] sm:$0xff] }
 0x1fa   : > { %1605 = vmatprep.subr.bf16.mxu1 %v2659_v19 }
 0x1fd   : > { %1607 = vmatpush1.bf16.msra.mxu1 %v2664_v62 }
 0x1fe   : > { %1609 = vmatprep.subr.bf16.mxu1 %v2694_v50 }
 0x201   : > { %1611 = vmatpush1.bf16.msra.mxu1 %v2696_v6 }
 0x202   : > { %1677 = vmatprep.subr.bf16.mxu1 %v2514_v55 }
 0x297   : > { %v595_v51 = vpop.f32.mrb[0].mxu1 }
 0x298   : > { %vm600_vm0 = vcmp.gt.f32.partialorder %v595_v51, 0.5  ;;  %v597_v18 = vpop.f32.mrb[1].mxu1 }
 0x299   : > { %v1313_v31 = vsel %vm600_vm0, 1.0, %v2995_v9  ;;  %vm601_vm1 = vcmp.gt.f32.partialorder %v597_v18, 0.5 }
 0x29a   : > { %v615_v57 = vsub.f32 1.0, %v1313_v31  ;;  %v1314_v59 = vsel %vm601_vm1, 1.0, %v2995_v9 }
 0x29b   : > { %v1350_v29 = vpack.c.bf16 %v1314_v59, %v1313_v31  ;;  %v616_v62 = vsub.f32 1.0, %v1314_v59  ;;  %v3057_v31 = vld [vmem:[#allocation33_spill] sm:$0xff]  ;;  %v3059_v59 = vld [vmem:[#allocation35_spill] sm:$0xff] }
 0x29c   : > { %v617_v19 = vmul.f32 %v615_v57, %v595_v51  ;;  %v3058_v57 = vld [vmem:[#allocation34_spill] sm:$0xff] }
 0x29d   : > { %614 = vst [vmem:[%s2470_s13] sm:$0xff] %v1350_v29  ;;  %v618_v50 = vmul.f32 %v616_v62, %v597_v18  ;;  %v3060_v29 = vld [vmem:[#allocation36_spill] sm:$0xff] }
 0x29e   : > { %v619_v6 = vmul.f32 0.25, %v617_v19  ;;  %v1319_v19 = vld [vmem:[%s2455_s8 + $0x18] sm:$0xff] }
 0x29f   : > { %v620_v55 = vmul.f32 0.25, %v618_v50  ;;  %v1318_v50 = vld [vmem:[%s2455_s8 + $0x10] sm:$0xff] }
 0x2a0   : > { %v624_v2 = vadd.f32 %v1316_v45, %v619_v6  ;;  %v3056_v45 = vld [vmem:[#allocation19_spill] sm:$0xff] }
 0x2a1   : > { %v625_v28 = vadd.f32 %v1317_v8, %v620_v55  ;;  %v3052_v8 = vld [vmem:[#allocation25_spill] sm:$0xff]  ;;  %v3053_v55 = vld [vmem:[#allocation26_spill] sm:$0xff] }
 0x2a3   : > { %690 = vmatprep.mubr.f32.mxu0 %v625_v28  ;;  %v3054_v28 = vld [vmem:[#allocation28_spill] sm:$0xff] }
 0x2a4   : > { %691 = vmatmul.mubr.f32.vlgmr.msra.gmra.mrb[2].mxu0 %v624_v2  ;;  %v3055_v2 = vld [vmem:[#allocation30_spill] sm:$0xff] }
 0x2a5   : > { %1615 = vmatpush1.bf16.msra.mxu0 %v3050_v10 }
 0x2a6   : > { %1617 = vmatprep.subr.bf16.mxu0 %v3051_v34 }
 0x2a9   : > { %1619 = vmatpush1.bf16.msra.mxu0 %v2481_v14 }
 0x2aa   : > { %1621 = vmatprep.subr.bf16.mxu0 %v2484_v15 }
 0x2ad   : > { %1623 = vmatpush1.bf16.msra.mxu0 %v2487_v20 }
 0x2ae   : > { %1625 = vmatprep.subr.bf16.mxu0 %v2490_v21 }
 0x2b1   : > { %1627 = vmatpush1.bf16.msra.mxu0 %v2493_v26 }
 0x2b2   : > { %1629 = vmatprep.subr.bf16.mxu0 %v2496_v27 }
 0x2b5   : > { %1631 = vmatpush1.bf16.msra.mxu0 %v2499_v32 }
 0x2b6   : > { %1633 = vmatprep.subr.bf16.mxu0 %v2502_v33 }
 0x2b9   : > { %1635 = vmatpush1.bf16.msra.mxu0 %v2505_v38 }
 0x2ba   : > { %1637 = vmatprep.subr.bf16.mxu0 %v2508_v40 }
 0x2bd   : > { %1639 = vmatpush1.bf16.msra.mxu0 %v2512_v53 }
 0x2be   : > { %1641 = vmatprep.subr.bf16.mxu0 %v2519_v60 }
 0x2c1   : > { %1643 = vmatpush1.bf16.msra.mxu0 %v2528_v5 }
 0x2c2   : > { %1645 = vmatprep.subr.bf16.mxu0 %v2534_v12 }
 0x2c5   : > { %1647 = vmatpush1.bf16.msra.mxu0 %v2540_v23 }
 0x2c6   : > { %1649 = vmatprep.subr.bf16.mxu0 %v2546_v30 }
 0x2c9   : > { %1651 = vmatpush1.bf16.msra.mxu0 %v2552_v41 }
 0x2ca   : > { %1653 = vmatprep.subr.bf16.mxu0 %v2558_v46 }
 0x2cd   : > { %1655 = vmatpush1.bf16.msra.mxu0 %v2564_v54 }
 0x2ce   : > { %1657 = vmatprep.subr.bf16.mxu0 %v2570_v63 }
 0x2d1   : > { %1659 = vmatpush1.bf16.msra.mxu0 %v2576_v13 }
 0x2d2   : > { %1661 = vmatprep.subr.bf16.mxu0 %v2582_v24 }
 0x2d5   : > { %1663 = vmatpush1.bf16.msra.mxu0 %v2588_v37 }
 0x2d6   : > { %1665 = vmatprep.subr.bf16.mxu0 %v2594_v48 }
 0x2d9   : > { %1667 = vmatpush1.bf16.msra.mxu0 %v2600_v0 }
 0x2da   : > { %1669 = vmatprep.subr.bf16.mxu0 %v3052_v8 }
 0x2dd   : > { %1671 = vmatpush1.bf16.msra.mxu0 %v3053_v55 }
 0x2de   : > { %1673 = vmatprep.subr.bf16.mxu0 %v3054_v28 }
 0x2e1   : > { %1675 = vmatpush1.bf16.msra.mxu0 %v3055_v2 }
 0x2e2   : > { %1741 = vmatprep.subr.bf16.mxu0 %v3056_v45  ;;  %v3061_v45 = vld [vmem:[#allocation37_spill] sm:$0xff] }
 0x377   : > { %v692_v62 = vpop.f32.mrb[2].mxu0 }
 0x378   : > { %v694_v6 = vpop.f32.mrb[3].mxu0  ;;  %v700_v18 = vmul.f32 %v1318_v50, %v692_v62  ;;  %v3063_v62 = vld [vmem:[#allocation39_spill] sm:$0xff]  ;;  %v3064_v50 = vld [vmem:[#allocation40_spill] sm:$0xff] }
 0x379   : > { %v701_v51 = vmul.f32 %v1319_v19, %v694_v6  ;;  %v3062_v19 = vld [vmem:[#allocation38_spill] sm:$0xff]  ;;  %v3065_v6 = vld [vmem:[#allocation41_spill] sm:$0xff] }
 0x37b   : > { %766 = vmatprep.mubr.f32.mxu1 %v701_v51  ;;  %v3066_v51 = vld [vmem:[#allocation42_spill] sm:$0xff] }
 0x37c   : > { %767 = vmatmul.mubr.f32.vlgmr.msra.gmra.mrb[2].mxu1 %v700_v18  ;;  %v3067_v18 = vld [vmem:[#allocation22_spill] sm:$0xff] }
 0x37d   : > { %1679 = vmatpush1.bf16.msra.mxu1 %v2516_v56 }
 0x37e   : > { %1681 = vmatprep.subr.bf16.mxu1 %v2521_v61 }
 0x381   : > { %1683 = vmatpush1.bf16.msra.mxu1 %v2525_v3 }
 0x382   : > { %1685 = vmatprep.subr.bf16.mxu1 %v2531_v7 }
 0x385   : > { %1687 = vmatpush1.bf16.msra.mxu1 %v2537_v22 }
 0x386   : > { %1689 = vmatprep.subr.bf16.mxu1 %v2543_v25 }
 0x389   : > { %1691 = vmatpush1.bf16.msra.mxu1 %v2549_v39 }
 0x38a   : > { %1693 = vmatprep.subr.bf16.mxu1 %v2555_v43 }
 0x38d   : > { %1695 = vmatpush1.bf16.msra.mxu1 %v2561_v52 }
 0x38e   : > { %1697 = vmatprep.subr.bf16.mxu1 %v2567_v58 }
 0x391   : > { %1699 = vmatpush1.bf16.msra.mxu1 %v2573_v11 }
 0x392   : > { %1701 = vmatprep.subr.bf16.mxu1 %v2579_v17 }
 0x395   : > { %1703 = vmatpush1.bf16.msra.mxu1 %v2585_v36 }
 0x396   : > { %1705 = vmatprep.subr.bf16.mxu1 %v2591_v44 }
 0x399   : > { %1707 = vmatpush1.bf16.msra.mxu1 %v3047_v4 }
 0x39a   : > { %1709 = vmatprep.subr.bf16.mxu1 %v3048_v16 }
 0x39d   : > { %1711 = vmatpush1.bf16.msra.mxu1 %v2609_v35 }
 0x39e   : > { %1713 = vmatprep.subr.bf16.mxu1 %v2615_v47 }
 0x3a1   : > { %1715 = vmatpush1.bf16.msra.mxu1 %v2621_v1 }
 0x3a2   : > { %1717 = vmatprep.subr.bf16.mxu1 %v3049_v42  ;;  %v1325_v42 = vld [vmem:[%s2448_s29 + $0x28] sm:$0xff] }
 0x3a5   : > { %1719 = vmatpush1.bf16.msra.mxu1 %v2632_v49 }
 0x3a6   : > { %1721 = vmatprep.subr.bf16.mxu1 %v3057_v31 }
 0x3a9   : > { %1723 = vmatpush1.bf16.msra.mxu1 %v3058_v57 }
 0x3aa   : > { %1725 = vmatprep.subr.bf16.mxu1 %v3059_v59  ;;  %v3068_v59 = vmov 0.0  }
 0x3ad   : > { %1727 = vmatpush1.bf16.msra.mxu1 %v3060_v29 }
 0x3ae   : > { %1729 = vmatprep.subr.bf16.mxu1 %v3061_v45 }
 0x3b1   : > { %1731 = vmatpush1.bf16.msra.mxu1 %v3062_v19 }
 0x3b2   : > { %1733 = vmatprep.subr.bf16.mxu1 %v3063_v62 }
 0x3b5   : > { %1735 = vmatpush1.bf16.msra.mxu1 %v3064_v50 }
 0x3b6   : > { %1737 = vmatprep.subr.bf16.mxu1 %v3065_v6 }
 0x3b9   : > { %1739 = vmatpush1.bf16.msra.mxu1 %v3066_v51  ;;  %v1324_v51 = vld [vmem:[%s2448_s29 + $0x20] sm:$0xff] }
 0x3ba   : > { %1805 = vmatprep.subr.bf16.mxu1 %v3067_v18 }
 0x44f   : > { %v768_v9 = vpop.f32.mrb[2].mxu1 }
 0x450   : > { %vm773_vm2 = vcmp.gt.f32.partialorder %v768_v9, 0.5  ;;  %v770_v29 = vpop.f32.mrb[3].mxu1 }
 0x451   : > { %v1320_v45 = vsel %vm773_vm2, 1.0, %v3068_v59  ;;  %vm774_vm3 = vcmp.gt.f32.partialorder %v770_v29, 0.5 }
 0x452   : > { %v789_v19 = vsub.f32 1.0, %v1320_v45  ;;  %v1321_v57 = vsel %vm774_vm3, 1.0, %v3068_v59 }
 0x453   : > { %v1351_v62 = vpack.c.bf16 %v1321_v57, %v1320_v45  ;;  %v790_v31 = vsub.f32 1.0, %v1321_v57 }
 0x454   : > { %v791_v50 = vmul.f32 %v789_v19, %v768_v9 }
 0x455   : > { %1323 = vst [vmem:[%s2470_s13 + $0x8] sm:$0xff] %v1351_v62  ;;  %v792_v6 = vmul.f32 %v790_v31, %v770_v29 }
 0x456   : > { %v793_v49 = vmul.f32 0.25, %v791_v50 }
 0x457   : > { %v794_v1 = vmul.f32 0.25, %v792_v6 }
 0x458   : > { %v798_v18 = vadd.f32 %v1324_v51, %v793_v49 }
 0x459   : > { %v799_v47 = vadd.f32 %v1325_v42, %v794_v1 }
 0x45b   : > { %864 = vmatprep.mubr.f32.mxu0 %v799_v47 }
 0x45c   : > { %865 = vmatmul.mubr.f32.vlgmr.msra.gmra.mrb[4].mxu0 %v798_v18 }
 0x45d   : > { %1743 = vmatpush1.bf16.msra.mxu0 %v3050_v10 }
 0x45e   : > { %1745 = vmatprep.subr.bf16.mxu0 %v3051_v34 }
 0x461   : > { %1747 = vmatpush1.bf16.msra.mxu0 %v2481_v14  ;;  %v1327_v14 = vld [vmem:[%s2455_s8 + $0x28] sm:$0xff] }
 0x462   : > { %1749 = vmatprep.subr.bf16.mxu0 %v2484_v15 }
 0x465   : > { %1751 = vmatpush1.bf16.msra.mxu0 %v2487_v20  ;;  %v1326_v20 = vld [vmem:[%s2455_s8 + $0x20] sm:$0xff] }
 0x466   : > { %1753 = vmatprep.subr.bf16.mxu0 %v2490_v21 }
 0x469   : > { %1755 = vmatpush1.bf16.msra.mxu0 %v2493_v26 }
 0x46a   : > { %1757 = vmatprep.subr.bf16.mxu0 %v2496_v27 }
 0x46d   : > { %1759 = vmatpush1.bf16.msra.mxu0 %v2499_v32  ;;  %v3069_v32 = vld [vmem:[#allocation27_spill] sm:$0xff] }
 0x46e   : > { %1761 = vmatprep.subr.bf16.mxu0 %v2502_v33  ;;  %v3070_v33 = vld [vmem:[#allocation29_spill] sm:$0xff] }
 0x471   : > { %1763 = vmatpush1.bf16.msra.mxu0 %v2505_v38  ;;  %v3071_v38 = vld [vmem:[#allocation31_spill] sm:$0xff] }
 0x472   : > { %1765 = vmatprep.subr.bf16.mxu0 %v2508_v40  ;;  %v3072_v40 = vld [vmem:[#allocation32_spill] sm:$0xff] }
 0x475   : > { %1767 = vmatpush1.bf16.msra.mxu0 %v2512_v53  ;;  %v3073_v53 = vld [vmem:[#allocation33_spill] sm:$0xff] }
 0x476   : > { %1769 = vmatprep.subr.bf16.mxu0 %v2519_v60  ;;  %v3075_v60 = vld [vmem:[#allocation35_spill] sm:$0xff] }
 0x479   : > { %1771 = vmatpush1.bf16.msra.mxu0 %v2528_v5  ;;  %v3078_v5 = vld [vmem:[#allocation38_spill] sm:$0xff] }
 0x47a   : > { %1773 = vmatprep.subr.bf16.mxu0 %v2534_v12  ;;  %v3080_v12 = vld [vmem:[#allocation40_spill] sm:$0xff] }
 0x47d   : > { %1775 = vmatpush1.bf16.msra.mxu0 %v2540_v23  ;;  %v3082_v23 = vld [vmem:[#allocation42_spill] sm:$0xff] }
 0x47e   : > { %1777 = vmatprep.subr.bf16.mxu0 %v2546_v30 }
 0x481   : > { %1779 = vmatpush1.bf16.msra.mxu0 %v2552_v41 }
 0x482   : > { %1781 = vmatprep.subr.bf16.mxu0 %v2558_v46 }
 0x485   : > { %1783 = vmatpush1.bf16.msra.mxu0 %v2564_v54 }
 0x486   : > { %1785 = vmatprep.subr.bf16.mxu0 %v2570_v63 }
 0x489   : > { %1787 = vmatpush1.bf16.msra.mxu0 %v2576_v13  ;;  %v1332_v13 = vld [vmem:[%s2448_s29 + $0x30] sm:$0xff] }
 0x48a   : > { %1789 = vmatprep.subr.bf16.mxu0 %v2582_v24 }
 0x48d   : > { %1791 = vmatpush1.bf16.msra.mxu0 %v2588_v37  ;;  %v1335_v37 = vld [vmem:[%s2455_s8 + $0x38] sm:$0xff] }
 0x48e   : > { %1793 = vmatprep.subr.bf16.mxu0 %v2594_v48  ;;  %v1334_v48 = vld [vmem:[%s2455_s8 + $0x30] sm:$0xff] }
 0x491   : > { %1795 = vmatpush1.bf16.msra.mxu0 %v2600_v0 }
 0x492   : > { %1797 = vmatprep.subr.bf16.mxu0 %v3052_v8 }
 0x495   : > { %1799 = vmatpush1.bf16.msra.mxu0 %v3053_v55 }
 0x496   : > { %1801 = vmatprep.subr.bf16.mxu0 %v3054_v28 }
 0x499   : > { %1803 = vmatpush1.bf16.msra.mxu0 %v3055_v2 }
 0x52f   : > { %v866_v15 = vpop.f32.mrb[4].mxu0 }
 0x530   : > { %v868_v21 = vpop.f32.mrb[5].mxu0  ;;  %v874_v27 = vmul.f32 %v1326_v20, %v866_v15 }
 0x531   : > { %v875_v26 = vmul.f32 %v1327_v14, %v868_v21 }
 0x533   : > { %940 = vmatprep.mubr.f32.mxu1 %v875_v26 }
 0x534   : > { %941 = vmatmul.mubr.f32.vlgmr.msra.gmra.mrb[4].mxu1 %v874_v27 }
 0x535   : > { %1807 = vmatpush1.bf16.msra.mxu1 %v2516_v56  ;;  %v3074_v56 = vld [vmem:[#allocation34_spill] sm:$0xff] }
 0x536   : > { %1809 = vmatprep.subr.bf16.mxu1 %v2521_v61  ;;  %v3076_v61 = vld [vmem:[#allocation36_spill] sm:$0xff] }
 0x539   : > { %1811 = vmatpush1.bf16.msra.mxu1 %v2525_v3  ;;  %v3077_v3 = vld [vmem:[#allocation37_spill] sm:$0xff] }
 0x53a   : > { %1813 = vmatprep.subr.bf16.mxu1 %v2531_v7  ;;  %v3079_v7 = vld [vmem:[#allocation39_spill] sm:$0xff] }
 0x53d   : > { %1815 = vmatpush1.bf16.msra.mxu1 %v2537_v22  ;;  %v3081_v22 = vld [vmem:[#allocation41_spill] sm:$0xff] }
 0x53e   : > { %1817 = vmatprep.subr.bf16.mxu1 %v2543_v25 }
 0x541   : > { %1819 = vmatpush1.bf16.msra.mxu1 %v2549_v39 }
 0x542   : > { %1821 = vmatprep.subr.bf16.mxu1 %v2555_v43 }
 0x545   : > { %1823 = vmatpush1.bf16.msra.mxu1 %v2561_v52 }
 0x546   : > { %1825 = vmatprep.subr.bf16.mxu1 %v2567_v58 }
 0x549   : > { %1827 = vmatpush1.bf16.msra.mxu1 %v2573_v11  ;;  %v1333_v11 = vld [vmem:[%s2448_s29 + $0x38] sm:$0xff] }
 0x54a   : > { %1829 = vmatprep.subr.bf16.mxu1 %v2579_v17 }
 0x54d   : > { %1831 = vmatpush1.bf16.msra.mxu1 %v2585_v36 }
 0x54e   : > { %1833 = vmatprep.subr.bf16.mxu1 %v2591_v44 }
 0x551   : > { %1835 = vmatpush1.bf16.msra.mxu1 %v3047_v4 }
 0x552   : > { %1837 = vmatprep.subr.bf16.mxu1 %v3048_v16 }
 0x555   : > { %1839 = vmatpush1.bf16.msra.mxu1 %v2609_v35 }
 0x556   : > { %1841 = vmatprep.subr.bf16.mxu1 %v3069_v32 }
 0x559   : > { %1843 = vmatpush1.bf16.msra.mxu1 %v3070_v33 }
 0x55a   : > { %1845 = vmatprep.subr.bf16.mxu1 %v3071_v38 }
 0x55d   : > { %1847 = vmatpush1.bf16.msra.mxu1 %v3072_v40 }
 0x55e   : > { %1849 = vmatprep.subr.bf16.mxu1 %v3073_v53 }
 0x561   : > { %1851 = vmatpush1.bf16.msra.mxu1 %v3074_v56 }
 0x562   : > { %1853 = vmatprep.subr.bf16.mxu1 %v3075_v60 }
 0x565   : > { %1855 = vmatpush1.bf16.msra.mxu1 %v3076_v61 }
 0x566   : > { %1857 = vmatprep.subr.bf16.mxu1 %v3077_v3 }
 0x569   : > { %1859 = vmatpush1.bf16.msra.mxu1 %v3078_v5 }
 0x56a   : > { %1861 = vmatprep.subr.bf16.mxu1 %v3079_v7 }
 0x56d   : > { %1863 = vmatpush1.bf16.msra.mxu1 %v3080_v12 }
 0x56e   : > { %1865 = vmatprep.subr.bf16.mxu1 %v3081_v22 }
 0x571   : > { %1867 = vmatpush1.bf16.msra.mxu1 %v3082_v23 }
 0x607   : > { %v942_v25 = vpop.f32.mrb[4].mxu1 }
 0x608   : > { %vm947_vm4 = vcmp.gt.f32.partialorder %v942_v25, 0.5  ;;  %v944_v30 = vpop.f32.mrb[5].mxu1 }
 0x609   : > { %v1328_v39 = vsel %vm947_vm4, 1.0, %v3068_v59  ;;  %vm948_vm5 = vcmp.gt.f32.partialorder %v944_v30, 0.5 }
 0x60a   : > { %v963_v41 = vsub.f32 1.0, %v1328_v39  ;;  %v1329_v43 = vsel %vm948_vm5, 1.0, %v3068_v59 }
 0x60b   : > { %v1352_v46 = vpack.c.bf16 %v1329_v43, %v1328_v39  ;;  %v964_v52 = vsub.f32 1.0, %v1329_v43 }
 0x60c   : > { %v965_v54 = vmul.f32 %v963_v41, %v942_v25 }
 0x60d   : > { %1331 = vst [vmem:[%s2470_s13 + $0x10] sm:$0xff] %v1352_v46  ;;  %v966_v58 = vmul.f32 %v964_v52, %v944_v30 }
 0x60e   : > { %v967_v63 = vmul.f32 0.25, %v965_v54 }
 0x60f   : > { %v968_v17 = vmul.f32 0.25, %v966_v58 }
 0x610   : > { %v972_v36 = vadd.f32 %v1332_v13, %v967_v63 }
 0x611   : > { %v973_v24 = vadd.f32 %v1333_v11, %v968_v17 }
 0x613   : > { %1038 = vmatprep.mubr.f32.mxu0 %v973_v24 }
 0x614   : > { %1039 = vmatmul.mubr.f32.vlgmr.msra.gmra.mrb[6].mxu0 %v972_v36 }
 0x6e7   : > { %v1040_v44 = vpop.f32.mrb[6].mxu0 }
 0x6e8   : > { %v1042_v0 = vpop.f32.mrb[7].mxu0  ;;  %v1048_v47 = vmul.f32 %v1334_v48, %v1040_v44 }
 0x6e9   : > { %v1049_v35 = vmul.f32 %v1335_v37, %v1042_v0 }
 0x6eb   : > { %1114 = vmatprep.mubr.f32.mxu1 %v1049_v35 }
 0x6ec   : > { %1115 = vmatmul.mubr.f32.vlgmr.msra.gmra.mrb[6].mxu1 %v1048_v47 }
 0x7bf   : > { %v1116_v1 = vpop.f32.mrb[6].mxu1 }
 0x7c0   : > { %vm1121_vm6 = vcmp.gt.f32.partialorder %v1116_v1, 0.5  ;;  %v1118_v49 = vpop.f32.mrb[7].mxu1 }
 0x7c1   : > { %v1336_v34 = vsel %vm1121_vm6, 1.0, %v3068_v59  ;;  %vm1122_vm7 = vcmp.gt.f32.partialorder %v1118_v49, 0.5 }
 0x7c2   : > { %v1137_v10 = vsub.f32 1.0, %v1336_v34  ;;  %v1337_v4 = vsel %vm1122_vm7, 1.0, %v3068_v59 }
 0x7c3   : > { %v1353_v16 = vpack.c.bf16 %v1337_v4, %v1336_v34  ;;  %v1138_v42 = vsub.f32 1.0, %v1337_v4 }
 0x7c4   : > { %v1139_v9 = vmul.f32 %v1137_v10, %v1116_v1 }
 0x7c5   : > { %1339 = vst [vmem:[%s2470_s13 + $0x18] sm:$0xff] %v1353_v16  ;;  %v1140_v8 = vmul.f32 %v1138_v42, %v1118_v49 }
 0x7c6   : > { %1141 = vst [vmem:[#allocation2] sm:$0xff] %v1139_v9 }
 0x7c7   : > { %2091 = shalt.err (!%p2088_p12)
}
 0x7c8   : > { %s2092_s10 = scalar_lea.hbm %s2889_s5, 512  ;;  %s2096_s9 = scalar_lea.hbm %s2945_s4, 1024 }
 0x7c9   : > { %p2093_p1 = scmp.ne.s32.totalorder %s2889_s5, %s2092_s10  ;;  %p2097_p13 = scmp.lt.u32.totalorder %s2889_s5, %s2945_s4 }
 0x7ca   : > { %p2098_p0 = scmp.lt.u32.totalorder %s2096_s9, %s2092_s10  ;;  %p2100_p6 = scmp.lt.u32.totalorder %s2092_s10, %s2889_s5 }
 0x7cb   : > { %p2094_p8 = pnand %p2093_p1, %p3083_p10 }
 0x7cc   : > { %p2099_p2 = por %p2098_p0, %p2097_p13 }
 0x7cd   : > { %p2095_p11 = pneg %p2094_p8 }
 0x7ce   : > { %p2101_p3 = por %p2100_p6, %p2099_p2 }
 0x7d0   : > { %p2102_p4 = pnand %p2101_p3, %p2095_p11 }
 0x7d2   : > { %2105 = shalt.err (!%p2102_p4)
}
 0x7d3   : > { %s2183_s12 = smov 128   ;;  %s2184_s25 = smov 8   ;;  %1142 = vst [vmem:[#allocation2 + $0x8] sm:$0xff] %v1140_v8 }
 0x7d4   : > { %1880 = dma.vmem_to_hbm [thread:$0]  (%p3083_p10), %s2891_s23, 512, %s2889_s5, %s1144_s18, %s2183_s12, %s2183_s12, %s2184_s25  }
 0x7d5 PF: > { %s1175_s8 = sand.u32 1, %s2152_s15   ;;  %p3084_p9 = scmp.ne.s32.totalorder %s3006_s24, 0 }
 0x7d6   : > { %p3085_p5 = scmp.ge.s32.totalorder %s2172_s20, 2  ;;  %s1176_s2 = scalar_lea.sflag [#allocation5], %s1175_s8 }
 0x7d8   : > { %p1897_p7 = pnand %p3085_p5, %p3084_p9 }
 0x7da   : > { %2147 = dma.done.wait (!%p1897_p7), %s1176_s2, 512  }
 0x7db   : > { %2149 = vsyncadd (!%p1897_p7), %s1176_s2, 4294966784  ;;  %s24_s20 = sadd.s32 1, %s2172_s20   ;;  %s3086_s18 = sld [smem:[#allocation17_spill]] }
 0x7dc   : > { %p21_p12 = scmp.ge.s32.totalorder %s24_s20, 4   ;;  %s3087_s19 = sld [smem:[#allocation18_spill]] }
 0x7dd   : > { %s3088_s15 = smov %s2156_s16  ;;  %s3089_s16 = smov %s2160_s17 }
 0x7de   : > { %s3090_s17 = smov %s2356_s7  ;;  %23 = sbr.rel (!%p21_p12) target bundleno = 13 (0xd), region = 115 }
 0x7e5   :  { %1181 = vsyncpa [#allocation4], 1 }
 0x7e6   :  { %1183 = vsyncpa [#allocation4 + $0x1], 1 }
 0x7e7   :  { %1184 = vsyncpa [#allocation7], 1 }
 0x7e8   :  { %1186 = vsyncpa [#allocation7 + $0x1], 1 }
 0x7e9   :  { %1187 = vsyncpa [#allocation10], 1 }
 0x7ea   :  { %1188 = vsyncpa [#allocation5], 1 }
 0x7eb   :  { %1190 = vsyncpa [#allocation5 + $0x1], 1 }

</bundles_post_ra>
